<compile_context>
chip_gen: v6e
topology: v6e:2x2x1
jax: 0.10.0
libtpu: 0.0.40
codegen_flags: <defaults>
</compile_context>

<pallas_src>
import jax
import jax.numpy as jnp
from jax.experimental import pallas as pl
from jax.experimental.pallas import tpu as pltpu


def _round_up(x, m):
    return (x + m - 1) // m * m


def _sigmoid(x):
    # sigmoid(x) == 0.5*(tanh(x/2)+1): single EUP push instead of exp + recip.
    return 0.5 * (jnp.tanh(0.5 * x) + 1.0)


def lstm_kernel(x_ref, wih_ref, whh_ref, wfc_ref, bfc_ref, out_ref, gx_ref):
    T, Bt, Ip = x_ref.shape
    Hp = whh_ref.shape[0]
    G = 4 * Hp
    w_dt = whh_ref.dtype

    # ---- 1) Input projection (incl. folded bias via the always-1 lane) for
    #         ALL timesteps in one well-shaped MXU matmul. -------------------
    x2 = x_ref[...].reshape(T * Bt, Ip)
    gx = jnp.dot(x2, wih_ref[...], preferred_element_type=jnp.float32)
    gx_ref[...] = gx.reshape(T, Bt, G).astype(gx_ref.dtype)

    whh = whh_ref[...]

    # ---- 2) Sequential recurrence: only h @ W_hh on the critical path. ------
    def step(t, carry):
        h, c = carry
        gates = gx_ref[t].astype(jnp.float32) + jnp.dot(
            h.astype(w_dt), whh, preferred_element_type=jnp.float32)
        i_g = _sigmoid(gates[:, 0 * Hp:1 * Hp])    # 128-lane aligned: free views
        f_g = _sigmoid(gates[:, 1 * Hp:2 * Hp])
        g_g = jnp.tanh(gates[:, 2 * Hp:3 * Hp])
        o_g = _sigmoid(gates[:, 3 * Hp:4 * Hp])
        c = f_g * c + i_g * g_g
        h = o_g * jnp.tanh(c)
        return h, c

    h0 = jnp.zeros((Bt, Hp), jnp.float32)
    c0 = jnp.zeros((Bt, Hp), jnp.float32)

    if T <= 16:
        unroll = True
    else:
        # Per-step transient f32 gate slab in vregs; keep unrolled live ranges
        # well inside the 64-vreg file to avoid spill vld/vst in the loop.
        step_vregs = (Bt * G) // 1024
        unroll = 8 if step_vregs <= 8 else (4 if step_vregs <= 16 else 2)
    h, _ = jax.lax.fori_loop(0, T, step, (h0, c0), unroll=unroll)

    # ---- 3) ReLU(h_T) @ W_fc + b_fc (runs once; weights loaded once). -------
    h_relu = jnp.maximum(h, 0.0)
    out_ref[...] = (jnp.dot(h_relu.astype(w_dt), wfc_ref[...],
                            preferred_element_type=jnp.float32)
                    + bfc_ref[...]).astype(out_ref.dtype)


def simple_lstm_forward(x, w_ih, w_hh, b_ih, b_hh, w_fc, b_fc,
                        matmul_dtype=jnp.bfloat16):
    """x: (B, T, I).  PyTorch layouts: w_ih (4H, I), w_hh (4H, H),
    b_ih/b_hh (4H,), w_fc (O, H), b_fc (O,).  Gate order i, f, g, o preserved.

    matmul_dtype defaults to bf16 on all generations (v5e/v6e/v7x MXUs are
    bf16-native); gate math and h/c state always stay f32.  Pass
    matmul_dtype=jnp.float32 when strict numerical parity is required
    (bf16 re-quantizes h every step, so error grows with T)."""
    B, T, I = x.shape
    H = w_hh.shape[1]
    O = w_fc.shape[0]
    f32 = jnp.float32

    # Padded / tiled sizes (sublane = 8, lane = 128).
    B_pad = _round_up(B, 8)
    if B_pad > 128:
        B_tile = 128
    elif B_pad >= 16:
        # Make at least two independent batch tiles so the "parallel" grid axis
        # gives both v7x TensorCores work.
        B_tile = _round_up(pl.cdiv(B_pad, 2), 8)
    else:
        B_tile = B_pad
    B_pad = _round_up(B_pad, B_tile)
    I_pad = _round_up(I + 1, 128)          # +1 spare lane carries the bias "1"
    H_pad = _round_up(H, 128)
    O_pad = _round_up(O, 128)
    n_btiles = B_pad // B_tile

    # x -> (T, B_pad, I_pad); pad lanes/rows are zero except lane I == 1.0,
    # which picks up the fused bias row of wih_p (bias folded into the matmul).
    xp = jnp.pad(jnp.asarray(x, f32),
                 ((0, B_pad - B), (0, 0), (0, I_pad - I)))
    xp = xp.at[:, :, I].set(1.0)
    xp = jnp.transpose(xp, (1, 0, 2)).astype(matmul_dtype)   # (T, B_pad, I_pad)

    def pack_gate_cols(w_t, rows, rows_pad):
        """(rows, 4H) -> (rows_pad, 4*H_pad): each gate block starts on a
        128-lane boundary, keeping PyTorch gate order i, f, g, o."""
        out = jnp.zeros((rows_pad, 4 * H_pad), f32)
        for k in range(4):
            out = out.at[:rows, k * H_pad:k * H_pad + H].set(
                w_t[:, k * H:(k + 1) * H])
        return out

    # W_ih^T with the fused bias (b_ih + b_hh) appended as row I.
    wih_rows = jnp.concatenate(
        [jnp.asarray(w_ih, f32).T,
         (jnp.asarray(b_ih, f32) + jnp.asarray(b_hh, f32)).reshape(1, 4 * H)],
        axis=0)
    wih_p = pack_gate_cols(wih_rows, I + 1, I_pad).astype(matmul_dtype)
    whh_p = pack_gate_cols(jnp.asarray(w_hh, f32).T, H, H_pad).astype(matmul_dtype)
    wfc_p = jnp.zeros((H_pad, O_pad), f32).at[:H, :O].set(
        jnp.asarray(w_fc, f32).T).astype(matmul_dtype)
    bfc_p = jnp.zeros((1, O_pad), f32).at[0, :O].set(jnp.asarray(b_fc, f32))

    # VMEM budget: 2x x-block + single-buffered weights + gx scratch + 2x out.
    mm_b = jnp.dtype(matmul_dtype).itemsize
    vmem_need = (
        2 * T * B_tile * I_pad * mm_b
        + (I_pad + H_pad) * 4 * H_pad * mm_b
        + H_pad * O_pad * mm_b + O_pad * 4
        + T * B_tile * 4 * H_pad * mm_b            # gx scratch (matmul_dtype)
        + 2 * B_tile * O_pad * 4
    )
    vmem_need = int(vmem_need * 1.25) + (2 << 20)   # headroom for live temporaries
    vmem_cap = 128 << 20
    try:
        vmem_cap = int(pltpu.get_tpu_info().vmem_capacity_bytes)
    except Exception:
        pass
    vmem_limit = max(16 << 20, min(vmem_need, vmem_cap))

    const_buf = pl.Buffered(1)   # constant-index blocks: no double buffering

    out_p = pl.pallas_call(
        lstm_kernel,
        out_shape=jax.ShapeDtypeStruct((B_pad, O_pad), f32),
        grid_spec=pltpu.PrefetchScalarGridSpec(
            num_scalar_prefetch=0,
            grid=(n_btiles,),                         # independent batch tiles
            in_specs=[
                pl.BlockSpec((T, B_tile, I_pad), lambda b: (0, b, 0)),
                # Constant-index weights: fetched once, single VMEM buffer.
                pl.BlockSpec((I_pad, 4 * H_pad), lambda b: (0, 0),
                             pipeline_mode=const_buf),
                pl.BlockSpec((H_pad, 4 * H_pad), lambda b: (0, 0),
                             pipeline_mode=const_buf),
                pl.BlockSpec((H_pad, O_pad), lambda b: (0, 0),
                             pipeline_mode=const_buf),
                pl.BlockSpec((1, O_pad), lambda b: (0, 0),
                             pipeline_mode=const_buf),
            ],
            out_specs=pl.BlockSpec((B_tile, O_pad), lambda b: (b, 0)),
            scratch_shapes=[
                # x-gate projections for all T steps of this batch tile,
                # stored in matmul_dtype (bf16 by default -> half the VMEM).
                pltpu.VMEM((T, B_tile, 4 * H_pad), matmul_dtype),
            ],
        ),
        compiler_params=pltpu.CompilerParams(
            # Batch tiles are independent -> shard across v7x's two TensorCores.
            dimension_semantics=("parallel",),
            vmem_limit_bytes=vmem_limit,
        ),
    )(xp, wih_p, whh_p, wfc_p, bfc_p)

    return out_p[:B, :O]


def _reference(x, w_ih, w_hh, b_ih, b_hh, w_fc, b_fc):
    """Pure-JAX reference mirroring torch.nn.LSTM + ReLU + Linear."""
    B, T, I = x.shape
    H = w_hh.shape[1]

    def step(carry, x_t):
        h, c = carry
        gates = x_t @ w_ih.T + b_ih + h @ w_hh.T + b_hh
        i = jax.nn.sigmoid(gates[:, 0 * H:1 * H])
        f = jax.nn.sigmoid(gates[:, 1 * H:2 * H])
        g = jnp.tanh(gates[:, 2 * H:3 * H])
        o = jax.nn.sigmoid(gates[:, 3 * H:4 * H])
        c = f * c + i * g
        h = o * jnp.tanh(c)
        return (h, c), None

    h0 = jnp.zeros((B, H), jnp.float32)
    c0 = jnp.zeros((B, H), jnp.float32)
    (hT, _), _ = jax.lax.scan(step, (h0, c0), jnp.swapaxes(x, 0, 1))
    return jnp.maximum(hT, 0.0) @ w_fc.T + b_fc


if __name__ == "__main__":
    # Small shapes consistent with the module's forward.
    B, T, I, H, O = 2, 8, 4, 32, 4

    key = jax.random.PRNGKey(0)
    k = jax.random.split(key, 8)
    bound = float(1.0 / (H ** 0.5))

    x = jax.random.normal(k[0], (B, T, I), jnp.float32)
    w_ih = jax.random.uniform(k[1], (4 * H, I), jnp.float32, -bound, bound)
    w_hh = jax.random.uniform(k[2], (4 * H, H), jnp.float32, -bound, bound)
    b_ih = jax.random.uniform(k[3], (4 * H,), jnp.float32, -bound, bound)
    b_hh = jax.random.uniform(k[4], (4 * H,), jnp.float32, -bound, bound)
    w_fc = jax.random.uniform(k[5], (O, H), jnp.float32, -bound, bound)
    b_fc = jax.random.uniform(k[6], (O,), jnp.float32, -bound, bound)

    # jit fuses the pad/transpose prepass with the kernel launch.
    fwd = jax.jit(simple_lstm_forward, static_argnames=("matmul_dtype",))

    ref = _reference(x, w_ih, w_hh, b_ih, b_hh, w_fc, b_fc)

    # Default path: bf16 MXU operands (f32 gate math / state).
    out_bf16 = jax.block_until_ready(fwd(x, w_ih, w_hh, b_ih, b_hh, w_fc, b_fc))
    # Strict-accuracy path: f32 operands everywhere.
    out_f32 = jax.block_until_ready(
        fwd(x, w_ih, w_hh, b_ih, b_hh, w_fc, b_fc, matmul_dtype=jnp.float32))

    assert out_bf16.shape == (B, O)
    assert out_f32.shape == (B, O)
    assert jnp.allclose(out_f32, ref, atol=2e-4, rtol=2e-4)
    # bf16 path: h is re-quantized each step, so tolerance is T-aware (looser).
    assert jnp.allclose(out_bf16, ref, atol=2e-2, rtol=2e-2)

    print("KERNEL_OK")
</pallas_src>

<mosaic_0001>
module attributes {stable_mosaic.version = 11 : i64} {
  func.func @lstm_kernel(%arg0: i32, %arg1: memref<8x8x128xbf16, #tpu.memory_space<vmem>>, %arg2: memref<128x512xbf16, #tpu.memory_space<vmem>>, %arg3: memref<128x512xbf16, #tpu.memory_space<vmem>>, %arg4: memref<128x128xbf16, #tpu.memory_space<vmem>>, %arg5: memref<1x128xf32, #tpu.memory_space<vmem>>, %arg6: memref<8x128xf32, #tpu.memory_space<vmem>>, %arg7: memref<8x8x512xbf16, #tpu.memory_space<vmem>>) attributes {dimension_semantics = [#tpu.dimension_semantics<parallel>], iteration_bounds = array<i64: 1>, scalar_prefetch = 0 : i64, scratch_operands = 1 : i64, tpu.core_type = #tpu.core_type<tc>, window_params = [{transform_indices = @transform_0, window_bounds = array<i64: 8, 8, 128>}, {pipeline_mode = #tpu.pipeline_mode<synchronous>, transform_indices = @transform_1, window_bounds = array<i64: 128, 512>}, {pipeline_mode = #tpu.pipeline_mode<synchronous>, transform_indices = @transform_2, window_bounds = array<i64: 128, 512>}, {pipeline_mode = #tpu.pipeline_mode<synchronous>, transform_indices = @transform_3, window_bounds = array<i64: 128, 128>}, {pipeline_mode = #tpu.pipeline_mode<synchronous>, transform_indices = @transform_4, window_bounds = array<i64: 1, 128>}, {transform_indices = @transform_5, window_bounds = array<i64: 8, 128>}]} {
    %c0 = arith.constant 0 : index
    %c0_0 = arith.constant 0 : index
    %c0_1 = arith.constant 0 : index
    %0 = vector.load %arg1[%c0, %c0_0, %c0_1] : memref<8x8x128xbf16, #tpu.memory_space<vmem>>, vector<8x8x128xbf16>
    %1 = vector.shape_cast %0 : vector<8x8x128xbf16> to vector<64x128xbf16>
    %c0_2 = arith.constant 0 : index
    %c0_3 = arith.constant 0 : index
    %2 = vector.load %arg2[%c0_2, %c0_3] : memref<128x512xbf16, #tpu.memory_space<vmem>>, vector<128x512xbf16>
    %cst = arith.constant dense<0.000000e+00> : vector<64x512xf32>
    %3 = tpu.matmul %1, %2, %cst {dimension_numbers = #tpu.dot_dimension_numbers<[1], [0], [0], [1], [0, 0, 1, 1], [], []>} : vector<64x128xbf16>, vector<128x512xbf16>, vector<64x512xf32> -> vector<64x512xf32>
    %4 = vector.shape_cast %3 : vector<64x512xf32> to vector<8x8x512xf32>
    %5 = arith.truncf %4 : vector<8x8x512xf32> to vector<8x8x512xbf16>
    %c0_4 = arith.constant 0 : index
    %c0_5 = arith.constant 0 : index
    %c0_6 = arith.constant 0 : index
    %6 = vector.load %arg7[%c0_4, %c0_5, %c0_6] : memref<8x8x512xbf16, #tpu.memory_space<vmem>>, vector<8x8x512xbf16>
    tpu.vector_store %arg7[%c0_4, %c0_5, %c0_6], %5 {strides = array<i32>} : memref<8x8x512xbf16, #tpu.memory_space<vmem>>, vector<8x8x512xbf16>,
    %c0_7 = arith.constant 0 : index
    %c0_8 = arith.constant 0 : index
    %7 = vector.load %arg3[%c0_7, %c0_8] : memref<128x512xbf16, #tpu.memory_space<vmem>>, vector<128x512xbf16>
    %cst_9 = arith.constant 0.000000e+00 : f32
    %8 = vector.broadcast %cst_9 : f32 to vector<8x128xf32>
    %cst_10 = arith.constant 0.000000e+00 : f32
    %9 = vector.broadcast %cst_10 : f32 to vector<8x128xf32>
    %c0_i32 = arith.constant 0 : i32
    %10 = arith.index_cast %c0_i32 : i32 to index
    %c0_11 = arith.constant 0 : index
    %c0_12 = arith.constant 0 : index
    %11 = vector.load %arg7[%10, %c0_11, %c0_12] : memref<8x8x512xbf16, #tpu.memory_space<vmem>>, vector<1x8x512xbf16>
    %12 = vector.shape_cast %11 : vector<1x8x512xbf16> to vector<8x512xbf16>
    %13 = arith.extf %12 : vector<8x512xbf16> to vector<8x512xf32>
    %14 = arith.truncf %8 : vector<8x128xf32> to vector<8x128xbf16>
    %cst_13 = arith.constant dense<0.000000e+00> : vector<8x512xf32>
    %15 = tpu.matmul %14, %7, %cst_13 {dimension_numbers = #tpu.dot_dimension_numbers<[1], [0], [0], [1], [0, 0, 1, 1], [], []>} : vector<8x128xbf16>, vector<128x512xbf16>, vector<8x512xf32> -> vector<8x512xf32>
    %16 = arith.addf %13, %15 : vector<8x512xf32>
    %17 = vector.extract_strided_slice %16 {offsets = [0, 0], sizes = [8, 128], strides = [1, 1]} : vector<8x512xf32> to vector<8x128xf32>
    %cst_14 = arith.constant 5.000000e-01 : f32
    %18 = vector.broadcast %cst_14 : f32 to vector<8x128xf32>
    %19 = arith.mulf %18, %17 : vector<8x128xf32>
    %20 = math.tanh %19 : vector<8x128xf32>
    %cst_15 = arith.constant 1.000000e+00 : f32
    %21 = vector.broadcast %cst_15 : f32 to vector<8x128xf32>
    %22 = arith.addf %20, %21 : vector<8x128xf32>
    %cst_16 = arith.constant 5.000000e-01 : f32
    %23 = vector.broadcast %cst_16 : f32 to vector<8x128xf32>
    %24 = arith.mulf %23, %22 : vector<8x128xf32>
    %25 = vector.extract_strided_slice %16 {offsets = [0, 128], sizes = [8, 128], strides = [1, 1]} : vector<8x512xf32> to vector<8x128xf32>
    %cst_17 = arith.constant 5.000000e-01 : f32
    %26 = vector.broadcast %cst_17 : f32 to vector<8x128xf32>
    %27 = arith.mulf %26, %25 : vector<8x128xf32>
    %28 = math.tanh %27 : vector<8x128xf32>
    %cst_18 = arith.constant 1.000000e+00 : f32
    %29 = vector.broadcast %cst_18 : f32 to vector<8x128xf32>
    %30 = arith.addf %28, %29 : vector<8x128xf32>
    %cst_19 = arith.constant 5.000000e-01 : f32
    %31 = vector.broadcast %cst_19 : f32 to vector<8x128xf32>
    %32 = arith.mulf %31, %30 : vector<8x128xf32>
    %33 = vector.extract_strided_slice %16 {offsets = [0, 256], sizes = [8, 128], strides = [1, 1]} : vector<8x512xf32> to vector<8x128xf32>
    %34 = math.tanh %33 : vector<8x128xf32>
    %35 = vector.extract_strided_slice %16 {offsets = [0, 384], sizes = [8, 128], strides = [1, 1]} : vector<8x512xf32> to vector<8x128xf32>
    %cst_20 = arith.constant 5.000000e-01 : f32
    %36 = vector.broadcast %cst_20 : f32 to vector<8x128xf32>
    %37 = arith.mulf %36, %35 : vector<8x128xf32>
    %38 = math.tanh %37 : vector<8x128xf32>
    %cst_21 = arith.constant 1.000000e+00 : f32
    %39 = vector.broadcast %cst_21 : f32 to vector<8x128xf32>
    %40 = arith.addf %38, %39 : vector<8x128xf32>
    %cst_22 = arith.constant 5.000000e-01 : f32
    %41 = vector.broadcast %cst_22 : f32 to vector<8x128xf32>
    %42 = arith.mulf %41, %40 : vector<8x128xf32>
    %43 = arith.mulf %32, %9 : vector<8x128xf32>
    %44 = arith.mulf %24, %34 : vector<8x128xf32>
    %45 = arith.addf %43, %44 : vector<8x128xf32>
    %46 = math.tanh %45 : vector<8x128xf32>
    %47 = arith.mulf %42, %46 : vector<8x128xf32>
    %c1_i32 = arith.constant 1 : i32
    %48 = arith.index_cast %c1_i32 : i32 to index
    %c0_23 = arith.constant 0 : index
    %c0_24 = arith.constant 0 : index
    %49 = vector.load %arg7[%48, %c0_23, %c0_24] : memref<8x8x512xbf16, #tpu.memory_space<vmem>>, vector<1x8x512xbf16>
    %50 = vector.shape_cast %49 : vector<1x8x512xbf16> to vector<8x512xbf16>
    %51 = arith.extf %50 : vector<8x512xbf16> to vector<8x512xf32>
    %52 = arith.truncf %47 : vector<8x128xf32> to vector<8x128xbf16>
    %cst_25 = arith.constant dense<0.000000e+00> : vector<8x512xf32>
    %53 = tpu.matmul %52, %7, %cst_25 {dimension_numbers = #tpu.dot_dimension_numbers<[1], [0], [0], [1], [0, 0, 1, 1], [], []>} : vector<8x128xbf16>, vector<128x512xbf16>, vector<8x512xf32> -> vector<8x512xf32>
    %54 = arith.addf %51, %53 : vector<8x512xf32>
    %55 = vector.extract_strided_slice %54 {offsets = [0, 0], sizes = [8, 128], strides = [1, 1]} : vector<8x512xf32> to vector<8x128xf32>
    %cst_26 = arith.constant 5.000000e-01 : f32
    %56 = vector.broadcast %cst_26 : f32 to vector<8x128xf32>
    %57 = arith.mulf %56, %55 : vector<8x128xf32>
    %58 = math.tanh %57 : vector<8x128xf32>
    %cst_27 = arith.constant 1.000000e+00 : f32
    %59 = vector.broadcast %cst_27 : f32 to vector<8x128xf32>
    %60 = arith.addf %58, %59 : vector<8x128xf32>
    %cst_28 = arith.constant 5.000000e-01 : f32
    %61 = vector.broadcast %cst_28 : f32 to vector<8x128xf32>
    %62 = arith.mulf %61, %60 : vector<8x128xf32>
    %63 = vector.extract_strided_slice %54 {offsets = [0, 128], sizes = [8, 128], strides = [1, 1]} : vector<8x512xf32> to vector<8x128xf32>
    %cst_29 = arith.constant 5.000000e-01 : f32
    %64 = vector.broadcast %cst_29 : f32 to vector<8x128xf32>
    %65 = arith.mulf %64, %63 : vector<8x128xf32>
    %66 = math.tanh %65 : vector<8x128xf32>
    %cst_30 = arith.constant 1.000000e+00 : f32
    %67 = vector.broadcast %cst_30 : f32 to vector<8x128xf32>
    %68 = arith.addf %66, %67 : vector<8x128xf32>
    %cst_31 = arith.constant 5.000000e-01 : f32
    %69 = vector.broadcast %cst_31 : f32 to vector<8x128xf32>
    %70 = arith.mulf %69, %68 : vector<8x128xf32>
    %71 = vector.extract_strided_slice %54 {offsets = [0, 256], sizes = [8, 128], strides = [1, 1]} : vector<8x512xf32> to vector<8x128xf32>
    %72 = math.tanh %71 : vector<8x128xf32>
    %73 = vector.extract_strided_slice %54 {offsets = [0, 384], sizes = [8, 128], strides = [1, 1]} : vector<8x512xf32> to vector<8x128xf32>
    %cst_32 = arith.constant 5.000000e-01 : f32
    %74 = vector.broadcast %cst_32 : f32 to vector<8x128xf32>
    %75 = arith.mulf %74, %73 : vector<8x128xf32>
    %76 = math.tanh %75 : vector<8x128xf32>
    %cst_33 = arith.constant 1.000000e+00 : f32
    %77 = vector.broadcast %cst_33 : f32 to vector<8x128xf32>
    %78 = arith.addf %76, %77 : vector<8x128xf32>
    %cst_34 = arith.constant 5.000000e-01 : f32
    %79 = vector.broadcast %cst_34 : f32 to vector<8x128xf32>
    %80 = arith.mulf %79, %78 : vector<8x128xf32>
    %81 = arith.mulf %70, %45 : vector<8x128xf32>
    %82 = arith.mulf %62, %72 : vector<8x128xf32>
    %83 = arith.addf %81, %82 : vector<8x128xf32>
    %84 = math.tanh %83 : vector<8x128xf32>
    %85 = arith.mulf %80, %84 : vector<8x128xf32>
    %c2_i32 = arith.constant 2 : i32
    %86 = arith.index_cast %c2_i32 : i32 to index
    %c0_35 = arith.constant 0 : index
    %c0_36 = arith.constant 0 : index
    %87 = vector.load %arg7[%86, %c0_35, %c0_36] : memref<8x8x512xbf16, #tpu.memory_space<vmem>>, vector<1x8x512xbf16>
    %88 = vector.shape_cast %87 : vector<1x8x512xbf16> to vector<8x512xbf16>
    %89 = arith.extf %88 : vector<8x512xbf16> to vector<8x512xf32>
    %90 = arith.truncf %85 : vector<8x128xf32> to vector<8x128xbf16>
    %cst_37 = arith.constant dense<0.000000e+00> : vector<8x512xf32>
    %91 = tpu.matmul %90, %7, %cst_37 {dimension_numbers = #tpu.dot_dimension_numbers<[1], [0], [0], [1], [0, 0, 1, 1], [], []>} : vector<8x128xbf16>, vector<128x512xbf16>, vector<8x512xf32> -> vector<8x512xf32>
    %92 = arith.addf %89, %91 : vector<8x512xf32>
    %93 = vector.extract_strided_slice %92 {offsets = [0, 0], sizes = [8, 128], strides = [1, 1]} : vector<8x512xf32> to vector<8x128xf32>
    %cst_38 = arith.constant 5.000000e-01 : f32
    %94 = vector.broadcast %cst_38 : f32 to vector<8x128xf32>
    %95 = arith.mulf %94, %93 : vector<8x128xf32>
    %96 = math.tanh %95 : vector<8x128xf32>
    %cst_39 = arith.constant 1.000000e+00 : f32
    %97 = vector.broadcast %cst_39 : f32 to vector<8x128xf32>
    %98 = arith.addf %96, %97 : vector<8x128xf32>
    %cst_40 = arith.constant 5.000000e-01 : f32
    %99 = vector.broadcast %cst_40 : f32 to vector<8x128xf32>
    %100 = arith.mulf %99, %98 : vector<8x128xf32>
    %101 = vector.extract_strided_slice %92 {offsets = [0, 128], sizes = [8, 128], strides = [1, 1]} : vector<8x512xf32> to vector<8x128xf32>
    %cst_41 = arith.constant 5.000000e-01 : f32
    %102 = vector.broadcast %cst_41 : f32 to vector<8x128xf32>
    %103 = arith.mulf %102, %101 : vector<8x128xf32>
    %104 = math.tanh %103 : vector<8x128xf32>
    %cst_42 = arith.constant 1.000000e+00 : f32
    %105 = vector.broadcast %cst_42 : f32 to vector<8x128xf32>
    %106 = arith.addf %104, %105 : vector<8x128xf32>
    %cst_43 = arith.constant 5.000000e-01 : f32
    %107 = vector.broadcast %cst_43 : f32 to vector<8x128xf32>
    %108 = arith.mulf %107, %106 : vector<8x128xf32>
    %109 = vector.extract_strided_slice %92 {offsets = [0, 256], sizes = [8, 128], strides = [1, 1]} : vector<8x512xf32> to vector<8x128xf32>
    %110 = math.tanh %109 : vector<8x128xf32>
    %111 = vector.extract_strided_slice %92 {offsets = [0, 384], sizes = [8, 128], strides = [1, 1]} : vector<8x512xf32> to vector<8x128xf32>
    %cst_44 = arith.constant 5.000000e-01 : f32
    %112 = vector.broadcast %cst_44 : f32 to vector<8x128xf32>
    %113 = arith.mulf %112, %111 : vector<8x128xf32>
    %114 = math.tanh %113 : vector<8x128xf32>
    %cst_45 = arith.constant 1.000000e+00 : f32
    %115 = vector.broadcast %cst_45 : f32 to vector<8x128xf32>
    %116 = arith.addf %114, %115 : vector<8x128xf32>
    %cst_46 = arith.constant 5.000000e-01 : f32
    %117 = vector.broadcast %cst_46 : f32 to vector<8x128xf32>
    %118 = arith.mulf %117, %116 : vector<8x128xf32>
    %119 = arith.mulf %108, %83 : vector<8x128xf32>
    %120 = arith.mulf %100, %110 : vector<8x128xf32>
    %121 = arith.addf %119, %120 : vector<8x128xf32>
    %122 = math.tanh %121 : vector<8x128xf32>
    %123 = arith.mulf %118, %122 : vector<8x128xf32>
    %c3_i32 = arith.constant 3 : i32
    %124 = arith.index_cast %c3_i32 : i32 to index
    %c0_47 = arith.constant 0 : index
    %c0_48 = arith.constant 0 : index
    %125 = vector.load %arg7[%124, %c0_47, %c0_48] : memref<8x8x512xbf16, #tpu.memory_space<vmem>>, vector<1x8x512xbf16>
    %126 = vector.shape_cast %125 : vector<1x8x512xbf16> to vector<8x512xbf16>
    %127 = arith.extf %126 : vector<8x512xbf16> to vector<8x512xf32>
    %128 = arith.truncf %123 : vector<8x128xf32> to vector<8x128xbf16>
    %cst_49 = arith.constant dense<0.000000e+00> : vector<8x512xf32>
    %129 = tpu.matmul %128, %7, %cst_49 {dimension_numbers = #tpu.dot_dimension_numbers<[1], [0], [0], [1], [0, 0, 1, 1], [], []>} : vector<8x128xbf16>, vector<128x512xbf16>, vector<8x512xf32> -> vector<8x512xf32>
    %130 = arith.addf %127, %129 : vector<8x512xf32>
    %131 = vector.extract_strided_slice %130 {offsets = [0, 0], sizes = [8, 128], strides = [1, 1]} : vector<8x512xf32> to vector<8x128xf32>
    %cst_50 = arith.constant 5.000000e-01 : f32
    %132 = vector.broadcast %cst_50 : f32 to vector<8x128xf32>
    %133 = arith.mulf %132, %131 : vector<8x128xf32>
    %134 = math.tanh %133 : vector<8x128xf32>
    %cst_51 = arith.constant 1.000000e+00 : f32
    %135 = vector.broadcast %cst_51 : f32 to vector<8x128xf32>
    %136 = arith.addf %134, %135 : vector<8x128xf32>
    %cst_52 = arith.constant 5.000000e-01 : f32
    %137 = vector.broadcast %cst_52 : f32 to vector<8x128xf32>
    %138 = arith.mulf %137, %136 : vector<8x128xf32>
    %139 = vector.extract_strided_slice %130 {offsets = [0, 128], sizes = [8, 128], strides = [1, 1]} : vector<8x512xf32> to vector<8x128xf32>
    %cst_53 = arith.constant 5.000000e-01 : f32
    %140 = vector.broadcast %cst_53 : f32 to vector<8x128xf32>
    %141 = arith.mulf %140, %139 : vector<8x128xf32>
    %142 = math.tanh %141 : vector<8x128xf32>
    %cst_54 = arith.constant 1.000000e+00 : f32
    %143 = vector.broadcast %cst_54 : f32 to vector<8x128xf32>
    %144 = arith.addf %142, %143 : vector<8x128xf32>
    %cst_55 = arith.constant 5.000000e-01 : f32
    %145 = vector.broadcast %cst_55 : f32 to vector<8x128xf32>
    %146 = arith.mulf %145, %144 : vector<8x128xf32>
    %147 = vector.extract_strided_slice %130 {offsets = [0, 256], sizes = [8, 128], strides = [1, 1]} : vector<8x512xf32> to vector<8x128xf32>
    %148 = math.tanh %147 : vector<8x128xf32>
    %149 = vector.extract_strided_slice %130 {offsets = [0, 384], sizes = [8, 128], strides = [1, 1]} : vector<8x512xf32> to vector<8x128xf32>
    %cst_56 = arith.constant 5.000000e-01 : f32
    %150 = vector.broadcast %cst_56 : f32 to vector<8x128xf32>
    %151 = arith.mulf %150, %149 : vector<8x128xf32>
    %152 = math.tanh %151 : vector<8x128xf32>
    %cst_57 = arith.constant 1.000000e+00 : f32
    %153 = vector.broadcast %cst_57 : f32 to vector<8x128xf32>
    %154 = arith.addf %152, %153 : vector<8x128xf32>
    %cst_58 = arith.constant 5.000000e-01 : f32
    %155 = vector.broadcast %cst_58 : f32 to vector<8x128xf32>
    %156 = arith.mulf %155, %154 : vector<8x128xf32>
    %157 = arith.mulf %146, %121 : vector<8x128xf32>
    %158 = arith.mulf %138, %148 : vector<8x128xf32>
    %159 = arith.addf %157, %158 : vector<8x128xf32>
    %160 = math.tanh %159 : vector<8x128xf32>
    %161 = arith.mulf %156, %160 : vector<8x128xf32>
    %c4_i32 = arith.constant 4 : i32
    %162 = arith.index_cast %c4_i32 : i32 to index
    %c0_59 = arith.constant 0 : index
    %c0_60 = arith.constant 0 : index
    %163 = vector.load %arg7[%162, %c0_59, %c0_60] : memref<8x8x512xbf16, #tpu.memory_space<vmem>>, vector<1x8x512xbf16>
    %164 = vector.shape_cast %163 : vector<1x8x512xbf16> to vector<8x512xbf16>
    %165 = arith.extf %164 : vector<8x512xbf16> to vector<8x512xf32>
    %166 = arith.truncf %161 : vector<8x128xf32> to vector<8x128xbf16>
    %cst_61 = arith.constant dense<0.000000e+00> : vector<8x512xf32>
    %167 = tpu.matmul %166, %7, %cst_61 {dimension_numbers = #tpu.dot_dimension_numbers<[1], [0], [0], [1], [0, 0, 1, 1], [], []>} : vector<8x128xbf16>, vector<128x512xbf16>, vector<8x512xf32> -> vector<8x512xf32>
    %168 = arith.addf %165, %167 : vector<8x512xf32>
    %169 = vector.extract_strided_slice %168 {offsets = [0, 0], sizes = [8, 128], strides = [1, 1]} : vector<8x512xf32> to vector<8x128xf32>
    %cst_62 = arith.constant 5.000000e-01 : f32
    %170 = vector.broadcast %cst_62 : f32 to vector<8x128xf32>
    %171 = arith.mulf %170, %169 : vector<8x128xf32>
    %172 = math.tanh %171 : vector<8x128xf32>
    %cst_63 = arith.constant 1.000000e+00 : f32
    %173 = vector.broadcast %cst_63 : f32 to vector<8x128xf32>
    %174 = arith.addf %172, %173 : vector<8x128xf32>
    %cst_64 = arith.constant 5.000000e-01 : f32
    %175 = vector.broadcast %cst_64 : f32 to vector<8x128xf32>
    %176 = arith.mulf %175, %174 : vector<8x128xf32>
    %177 = vector.extract_strided_slice %168 {offsets = [0, 128], sizes = [8, 128], strides = [1, 1]} : vector<8x512xf32> to vector<8x128xf32>
    %cst_65 = arith.constant 5.000000e-01 : f32
    %178 = vector.broadcast %cst_65 : f32 to vector<8x128xf32>
    %179 = arith.mulf %178, %177 : vector<8x128xf32>
    %180 = math.tanh %179 : vector<8x128xf32>
    %cst_66 = arith.constant 1.000000e+00 : f32
    %181 = vector.broadcast %cst_66 : f32 to vector<8x128xf32>
    %182 = arith.addf %180, %181 : vector<8x128xf32>
    %cst_67 = arith.constant 5.000000e-01 : f32
    %183 = vector.broadcast %cst_67 : f32 to vector<8x128xf32>
    %184 = arith.mulf %183, %182 : vector<8x128xf32>
    %185 = vector.extract_strided_slice %168 {offsets = [0, 256], sizes = [8, 128], strides = [1, 1]} : vector<8x512xf32> to vector<8x128xf32>
    %186 = math.tanh %185 : vector<8x128xf32>
    %187 = vector.extract_strided_slice %168 {offsets = [0, 384], sizes = [8, 128], strides = [1, 1]} : vector<8x512xf32> to vector<8x128xf32>
    %cst_68 = arith.constant 5.000000e-01 : f32
    %188 = vector.broadcast %cst_68 : f32 to vector<8x128xf32>
    %189 = arith.mulf %188, %187 : vector<8x128xf32>
    %190 = math.tanh %189 : vector<8x128xf32>
    %cst_69 = arith.constant 1.000000e+00 : f32
    %191 = vector.broadcast %cst_69 : f32 to vector<8x128xf32>
    %192 = arith.addf %190, %191 : vector<8x128xf32>
    %cst_70 = arith.constant 5.000000e-01 : f32
    %193 = vector.broadcast %cst_70 : f32 to vector<8x128xf32>
    %194 = arith.mulf %193, %192 : vector<8x128xf32>
    %195 = arith.mulf %184, %159 : vector<8x128xf32>
    %196 = arith.mulf %176, %186 : vector<8x128xf32>
    %197 = arith.addf %195, %196 : vector<8x128xf32>
    %198 = math.tanh %197 : vector<8x128xf32>
    %199 = arith.mulf %194, %198 : vector<8x128xf32>
    %c5_i32 = arith.constant 5 : i32
    %200 = arith.index_cast %c5_i32 : i32 to index
    %c0_71 = arith.constant 0 : index
    %c0_72 = arith.constant 0 : index
    %201 = vector.load %arg7[%200, %c0_71, %c0_72] : memref<8x8x512xbf16, #tpu.memory_space<vmem>>, vector<1x8x512xbf16>
    %202 = vector.shape_cast %201 : vector<1x8x512xbf16> to vector<8x512xbf16>
    %203 = arith.extf %202 : vector<8x512xbf16> to vector<8x512xf32>
    %204 = arith.truncf %199 : vector<8x128xf32> to vector<8x128xbf16>
    %cst_73 = arith.constant dense<0.000000e+00> : vector<8x512xf32>
    %205 = tpu.matmul %204, %7, %cst_73 {dimension_numbers = #tpu.dot_dimension_numbers<[1], [0], [0], [1], [0, 0, 1, 1], [], []>} : vector<8x128xbf16>, vector<128x512xbf16>, vector<8x512xf32> -> vector<8x512xf32>
    %206 = arith.addf %203, %205 : vector<8x512xf32>
    %207 = vector.extract_strided_slice %206 {offsets = [0, 0], sizes = [8, 128], strides = [1, 1]} : vector<8x512xf32> to vector<8x128xf32>
    %cst_74 = arith.constant 5.000000e-01 : f32
    %208 = vector.broadcast %cst_74 : f32 to vector<8x128xf32>
    %209 = arith.mulf %208, %207 : vector<8x128xf32>
    %210 = math.tanh %209 : vector<8x128xf32>
    %cst_75 = arith.constant 1.000000e+00 : f32
    %211 = vector.broadcast %cst_75 : f32 to vector<8x128xf32>
    %212 = arith.addf %210, %211 : vector<8x128xf32>
    %cst_76 = arith.constant 5.000000e-01 : f32
    %213 = vector.broadcast %cst_76 : f32 to vector<8x128xf32>
    %214 = arith.mulf %213, %212 : vector<8x128xf32>
    %215 = vector.extract_strided_slice %206 {offsets = [0, 128], sizes = [8, 128], strides = [1, 1]} : vector<8x512xf32> to vector<8x128xf32>
    %cst_77 = arith.constant 5.000000e-01 : f32
    %216 = vector.broadcast %cst_77 : f32 to vector<8x128xf32>
    %217 = arith.mulf %216, %215 : vector<8x128xf32>
    %218 = math.tanh %217 : vector<8x128xf32>
    %cst_78 = arith.constant 1.000000e+00 : f32
    %219 = vector.broadcast %cst_78 : f32 to vector<8x128xf32>
    %220 = arith.addf %218, %219 : vector<8x128xf32>
    %cst_79 = arith.constant 5.000000e-01 : f32
    %221 = vector.broadcast %cst_79 : f32 to vector<8x128xf32>
    %222 = arith.mulf %221, %220 : vector<8x128xf32>
    %223 = vector.extract_strided_slice %206 {offsets = [0, 256], sizes = [8, 128], strides = [1, 1]} : vector<8x512xf32> to vector<8x128xf32>
    %224 = math.tanh %223 : vector<8x128xf32>
    %225 = vector.extract_strided_slice %206 {offsets = [0, 384], sizes = [8, 128], strides = [1, 1]} : vector<8x512xf32> to vector<8x128xf32>
    %cst_80 = arith.constant 5.000000e-01 : f32
    %226 = vector.broadcast %cst_80 : f32 to vector<8x128xf32>
    %227 = arith.mulf %226, %225 : vector<8x128xf32>
    %228 = math.tanh %227 : vector<8x128xf32>
    %cst_81 = arith.constant 1.000000e+00 : f32
    %229 = vector.broadcast %cst_81 : f32 to vector<8x128xf32>
    %230 = arith.addf %228, %229 : vector<8x128xf32>
    %cst_82 = arith.constant 5.000000e-01 : f32
    %231 = vector.broadcast %cst_82 : f32 to vector<8x128xf32>
    %232 = arith.mulf %231, %230 : vector<8x128xf32>
    %233 = arith.mulf %222, %197 : vector<8x128xf32>
    %234 = arith.mulf %214, %224 : vector<8x128xf32>
    %235 = arith.addf %233, %234 : vector<8x128xf32>
    %236 = math.tanh %235 : vector<8x128xf32>
    %237 = arith.mulf %232, %236 : vector<8x128xf32>
    %c6_i32 = arith.constant 6 : i32
    %238 = arith.index_cast %c6_i32 : i32 to index
    %c0_83 = arith.constant 0 : index
    %c0_84 = arith.constant 0 : index
    %239 = vector.load %arg7[%238, %c0_83, %c0_84] : memref<8x8x512xbf16, #tpu.memory_space<vmem>>, vector<1x8x512xbf16>
    %240 = vector.shape_cast %239 : vector<1x8x512xbf16> to vector<8x512xbf16>
    %241 = arith.extf %240 : vector<8x512xbf16> to vector<8x512xf32>
    %242 = arith.truncf %237 : vector<8x128xf32> to vector<8x128xbf16>
    %cst_85 = arith.constant dense<0.000000e+00> : vector<8x512xf32>
    %243 = tpu.matmul %242, %7, %cst_85 {dimension_numbers = #tpu.dot_dimension_numbers<[1], [0], [0], [1], [0, 0, 1, 1], [], []>} : vector<8x128xbf16>, vector<128x512xbf16>, vector<8x512xf32> -> vector<8x512xf32>
    %244 = arith.addf %241, %243 : vector<8x512xf32>
    %245 = vector.extract_strided_slice %244 {offsets = [0, 0], sizes = [8, 128], strides = [1, 1]} : vector<8x512xf32> to vector<8x128xf32>
    %cst_86 = arith.constant 5.000000e-01 : f32
    %246 = vector.broadcast %cst_86 : f32 to vector<8x128xf32>
    %247 = arith.mulf %246, %245 : vector<8x128xf32>
    %248 = math.tanh %247 : vector<8x128xf32>
    %cst_87 = arith.constant 1.000000e+00 : f32
    %249 = vector.broadcast %cst_87 : f32 to vector<8x128xf32>
    %250 = arith.addf %248, %249 : vector<8x128xf32>
    %cst_88 = arith.constant 5.000000e-01 : f32
    %251 = vector.broadcast %cst_88 : f32 to vector<8x128xf32>
    %252 = arith.mulf %251, %250 : vector<8x128xf32>
    %253 = vector.extract_strided_slice %244 {offsets = [0, 128], sizes = [8, 128], strides = [1, 1]} : vector<8x512xf32> to vector<8x128xf32>
    %cst_89 = arith.constant 5.000000e-01 : f32
    %254 = vector.broadcast %cst_89 : f32 to vector<8x128xf32>
    %255 = arith.mulf %254, %253 : vector<8x128xf32>
    %256 = math.tanh %255 : vector<8x128xf32>
    %cst_90 = arith.constant 1.000000e+00 : f32
    %257 = vector.broadcast %cst_90 : f32 to vector<8x128xf32>
    %258 = arith.addf %256, %257 : vector<8x128xf32>
    %cst_91 = arith.constant 5.000000e-01 : f32
    %259 = vector.broadcast %cst_91 : f32 to vector<8x128xf32>
    %260 = arith.mulf %259, %258 : vector<8x128xf32>
    %261 = vector.extract_strided_slice %244 {offsets = [0, 256], sizes = [8, 128], strides = [1, 1]} : vector<8x512xf32> to vector<8x128xf32>
    %262 = math.tanh %261 : vector<8x128xf32>
    %263 = vector.extract_strided_slice %244 {offsets = [0, 384], sizes = [8, 128], strides = [1, 1]} : vector<8x512xf32> to vector<8x128xf32>
    %cst_92 = arith.constant 5.000000e-01 : f32
    %264 = vector.broadcast %cst_92 : f32 to vector<8x128xf32>
    %265 = arith.mulf %264, %263 : vector<8x128xf32>
    %266 = math.tanh %265 : vector<8x128xf32>
    %cst_93 = arith.constant 1.000000e+00 : f32
    %267 = vector.broadcast %cst_93 : f32 to vector<8x128xf32>
    %268 = arith.addf %266, %267 : vector<8x128xf32>
    %cst_94 = arith.constant 5.000000e-01 : f32
    %269 = vector.broadcast %cst_94 : f32 to vector<8x128xf32>
    %270 = arith.mulf %269, %268 : vector<8x128xf32>
    %271 = arith.mulf %260, %235 : vector<8x128xf32>
    %272 = arith.mulf %252, %262 : vector<8x128xf32>
    %273 = arith.addf %271, %272 : vector<8x128xf32>
    %274 = math.tanh %273 : vector<8x128xf32>
    %275 = arith.mulf %270, %274 : vector<8x128xf32>
    %c7_i32 = arith.constant 7 : i32
    %276 = arith.index_cast %c7_i32 : i32 to index
    %c0_95 = arith.constant 0 : index
    %c0_96 = arith.constant 0 : index
    %277 = vector.load %arg7[%276, %c0_95, %c0_96] : memref<8x8x512xbf16, #tpu.memory_space<vmem>>, vector<1x8x512xbf16>
    %278 = vector.shape_cast %277 : vector<1x8x512xbf16> to vector<8x512xbf16>
    %279 = arith.extf %278 : vector<8x512xbf16> to vector<8x512xf32>
    %280 = arith.truncf %275 : vector<8x128xf32> to vector<8x128xbf16>
    %cst_97 = arith.constant dense<0.000000e+00> : vector<8x512xf32>
    %281 = tpu.matmul %280, %7, %cst_97 {dimension_numbers = #tpu.dot_dimension_numbers<[1], [0], [0], [1], [0, 0, 1, 1], [], []>} : vector<8x128xbf16>, vector<128x512xbf16>, vector<8x512xf32> -> vector<8x512xf32>
    %282 = arith.addf %279, %281 : vector<8x512xf32>
    %283 = vector.extract_strided_slice %282 {offsets = [0, 0], sizes = [8, 128], strides = [1, 1]} : vector<8x512xf32> to vector<8x128xf32>
    %cst_98 = arith.constant 5.000000e-01 : f32
    %284 = vector.broadcast %cst_98 : f32 to vector<8x128xf32>
    %285 = arith.mulf %284, %283 : vector<8x128xf32>
    %286 = math.tanh %285 : vector<8x128xf32>
    %cst_99 = arith.constant 1.000000e+00 : f32
    %287 = vector.broadcast %cst_99 : f32 to vector<8x128xf32>
    %288 = arith.addf %286, %287 : vector<8x128xf32>
    %cst_100 = arith.constant 5.000000e-01 : f32
    %289 = vector.broadcast %cst_100 : f32 to vector<8x128xf32>
    %290 = arith.mulf %289, %288 : vector<8x128xf32>
    %291 = vector.extract_strided_slice %282 {offsets = [0, 128], sizes = [8, 128], strides = [1, 1]} : vector<8x512xf32> to vector<8x128xf32>
    %cst_101 = arith.constant 5.000000e-01 : f32
    %292 = vector.broadcast %cst_101 : f32 to vector<8x128xf32>
    %293 = arith.mulf %292, %291 : vector<8x128xf32>
    %294 = math.tanh %293 : vector<8x128xf32>
    %cst_102 = arith.constant 1.000000e+00 : f32
    %295 = vector.broadcast %cst_102 : f32 to vector<8x128xf32>
    %296 = arith.addf %294, %295 : vector<8x128xf32>
    %cst_103 = arith.constant 5.000000e-01 : f32
    %297 = vector.broadcast %cst_103 : f32 to vector<8x128xf32>
    %298 = arith.mulf %297, %296 : vector<8x128xf32>
    %299 = vector.extract_strided_slice %282 {offsets = [0, 256], sizes = [8, 128], strides = [1, 1]} : vector<8x512xf32> to vector<8x128xf32>
    %300 = math.tanh %299 : vector<8x128xf32>
    %301 = vector.extract_strided_slice %282 {offsets = [0, 384], sizes = [8, 128], strides = [1, 1]} : vector<8x512xf32> to vector<8x128xf32>
    %cst_104 = arith.constant 5.000000e-01 : f32
    %302 = vector.broadcast %cst_104 : f32 to vector<8x128xf32>
    %303 = arith.mulf %302, %301 : vector<8x128xf32>
    %304 = math.tanh %303 : vector<8x128xf32>
    %cst_105 = arith.constant 1.000000e+00 : f32
    %305 = vector.broadcast %cst_105 : f32 to vector<8x128xf32>
    %306 = arith.addf %304, %305 : vector<8x128xf32>
    %cst_106 = arith.constant 5.000000e-01 : f32
    %307 = vector.broadcast %cst_106 : f32 to vector<8x128xf32>
    %308 = arith.mulf %307, %306 : vector<8x128xf32>
    %309 = arith.mulf %298, %273 : vector<8x128xf32>
    %310 = arith.mulf %290, %300 : vector<8x128xf32>
    %311 = arith.addf %309, %310 : vector<8x128xf32>
    %312 = math.tanh %311 : vector<8x128xf32>
    %313 = arith.mulf %308, %312 : vector<8x128xf32>
    %c8_i32 = arith.constant 8 : i32
    %cst_107 = arith.constant 0.000000e+00 : f32
    %314 = vector.broadcast %cst_107 : f32 to vector<8x128xf32>
    %315 = arith.maximumf %313, %314 : vector<8x128xf32>
    %316 = arith.truncf %315 : vector<8x128xf32> to vector<8x128xbf16>
    %c0_108 = arith.constant 0 : index
    %c0_109 = arith.constant 0 : index
    %317 = vector.load %arg4[%c0_108, %c0_109] : memref<128x128xbf16, #tpu.memory_space<vmem>>, vector<128x128xbf16>
    %cst_110 = arith.constant dense<0.000000e+00> : vector<8x128xf32>
    %318 = tpu.matmul %316, %317, %cst_110 {dimension_numbers = #tpu.dot_dimension_numbers<[1], [0], [0], [1], [0, 0, 1, 1], [], []>} : vector<8x128xbf16>, vector<128x128xbf16>, vector<8x128xf32> -> vector<8x128xf32>
    %c0_111 = arith.constant 0 : index
    %c0_112 = arith.constant 0 : index
    %319 = vector.load %arg5[%c0_111, %c0_112] : memref<1x128xf32, #tpu.memory_space<vmem>>, vector<1x128xf32>
    %320 = vector.broadcast %319 : vector<1x128xf32> to vector<8x128xf32>
    %321 = arith.addf %318, %320 : vector<8x128xf32>
    %c0_113 = arith.constant 0 : index
    %c0_114 = arith.constant 0 : index
    %322 = vector.load %arg6[%c0_113, %c0_114] : memref<8x128xf32, #tpu.memory_space<vmem>>, vector<8x128xf32>
    tpu.vector_store %arg6[%c0_113, %c0_114], %321 {strides = array<i32>} : memref<8x128xf32, #tpu.memory_space<vmem>>, vector<8x128xf32>,
    return
  }
  func.func @transform_0(%arg0: i32) -> (i32, i32, i32) {
    %c0_i32 = arith.constant 0 : i32
    %c0_i32_0 = arith.constant 0 : i32
    %c0_i32_1 = arith.constant 0 : i32
    return %c0_i32, %arg0, %c0_i32_0 : i32, i32, i32
  }
  func.func @transform_1(%arg0: i32) -> (i32, i32) {
    %c0_i32 = arith.constant 0 : i32
    %c0_i32_0 = arith.constant 0 : i32
    %c0_i32_1 = arith.constant 0 : i32
    return %c0_i32, %c0_i32_0 : i32, i32
  }
  func.func @transform_2(%arg0: i32) -> (i32, i32) {
    %c0_i32 = arith.constant 0 : i32
    %c0_i32_0 = arith.constant 0 : i32
    %c0_i32_1 = arith.constant 0 : i32
    return %c0_i32, %c0_i32_0 : i32, i32
  }
  func.func @transform_3(%arg0: i32) -> (i32, i32) {
    %c0_i32 = arith.constant 0 : i32
    %c0_i32_0 = arith.constant 0 : i32
    %c0_i32_1 = arith.constant 0 : i32
    return %c0_i32, %c0_i32_0 : i32, i32
  }
  func.func @transform_4(%arg0: i32) -> (i32, i32) {
    %c0_i32 = arith.constant 0 : i32
    %c0_i32_0 = arith.constant 0 : i32
    %c0_i32_1 = arith.constant 0 : i32
    return %c0_i32, %c0_i32_0 : i32, i32
  }
  func.func @transform_5(%arg0: i32) -> (i32, i32) {
    %c0_i32 = arith.constant 0 : i32
    %c0_i32_0 = arith.constant 0 : i32
    return %arg0, %c0_i32 : i32, i32
  }
}

</mosaic_0001>

<bundles_post_ra>
// kernel: simple_lstm_forward.1
= control target key start
LH: loop header
LB: loop body
LE: loop exit
PB: predicated region body
PF: predicated region fallthrough
CT: control target
= control target key end

     0   :  { %v2900_v1 = vmov 0   ;;  %vm2102_vm0 = vmmov 0   ;;  %s2894_s1 = inlined_call_operand.vmem [shape: bf16[128,512], index: 1, kind: input, shape index: {}]   ;;  %s2895_s0 = inlined_call_operand.vmem [shape: bf16[8,8,128], index: 0, kind: input, shape index: {}]   ;;  %s2896_s2 = inlined_call_operand.vmem [shape: bf16[128,512], index: 2, kind: input, shape index: {}]   ;;  %s2897_s3 = inlined_call_operand.vmem [shape: bf16[128,128], index: 3, kind: input, shape index: {}]   ;;  %s2898_s4 = inlined_call_operand.vmem [shape: f32[1,128], index: 4, kind: input, shape index: {}]   ;;  %s2899_s5 = inlined_call_operand.vmem [shape: f32[8,128], index: 5, kind: output, shape index: {}]  }
   0x1   :  { %v1880_v0 = vld [vmem:[%s2894_s1 + $0xe4] ss:$16 sps:$4 sm:$0xff]   ;;  %277 = vmatprep.mubr.bf16.mxu0 %v2900_v1  ;;  %350 = vmatprep.mubr.bf16.mxu1 %v2900_v1  ;;  %v1882_v2 = vld [vmem:[%s2894_s1 + $0xec] ss:$16 sps:$4 sm:$0xff]   ;;  %v1884_v3 = vld [vmem:[%s2894_s1 + $0xe0] ss:$16 sps:$4 sm:$0xff]  }
   0x2   :  { %245 = vmatprep.subr.bf16.mxu0 %v1880_v0  ;;  %v1885_v4 = vld [vmem:[%s2894_s1 + $0xe8] ss:$16 sps:$4 sm:$0xff]   ;;  %318 = vmatprep.subr.bf16.mxu1 %v1882_v2  ;;  %v1886_v5 = vld [vmem:[%s2894_s1 + $0xc4] ss:$16 sps:$4 sm:$0xff]   ;;  %v1888_v6 = vld [vmem:[%s2894_s1 + $0xcc] ss:$16 sps:$4 sm:$0xff]  }
   0x3   :  { %246 = vmatpush1.bf16.msra.mxu0 %v1884_v3  ;;  %319 = vmatpush1.bf16.msra.mxu1 %v1885_v4  ;;  %v1890_v7 = vld [vmem:[%s2894_s1 + $0xc0] ss:$16 sps:$4 sm:$0xff]   ;;  %v1891_v8 = vld [vmem:[%s2894_s1 + $0xc8] ss:$16 sps:$4 sm:$0xff]   ;;  %v1892_v9 = vld [vmem:[%s2894_s1 + $0xa4] ss:$16 sps:$4 sm:$0xff]  }
   0x4   :  { %247 = vmatprep.subr.bf16.mxu0 %v1886_v5  ;;  %320 = vmatprep.subr.bf16.mxu1 %v1888_v6  ;;  %v1894_v10 = vld [vmem:[%s2894_s1 + $0xac] ss:$16 sps:$4 sm:$0xff]   ;;  %v1896_v11 = vld [vmem:[%s2894_s1 + $0xa0] ss:$16 sps:$4 sm:$0xff]   ;;  %v1897_v12 = vld [vmem:[%s2894_s1 + $0xa8] ss:$16 sps:$4 sm:$0xff]  }
   0x5   :  { %v1898_v13 = vld [vmem:[%s2894_s1 + $0x84] ss:$16 sps:$4 sm:$0xff]   ;;  %v1900_v14 = vld [vmem:[%s2894_s1 + $0x8c] ss:$16 sps:$4 sm:$0xff]   ;;  %v1902_v15 = vld [vmem:[%s2894_s1 + $0x80] ss:$16 sps:$4 sm:$0xff]  }
   0x6   :  { %v1903_v16 = vld [vmem:[%s2894_s1 + $0x88] ss:$16 sps:$4 sm:$0xff]   ;;  %v1904_v17 = vld [vmem:[%s2894_s1 + $0x64] ss:$16 sps:$4 sm:$0xff]   ;;  %v1906_v18 = vld [vmem:[%s2894_s1 + $0x6c] ss:$16 sps:$4 sm:$0xff]  }
   0x7   :  { %248 = vmatpush1.bf16.msra.mxu0 %v1890_v7  ;;  %321 = vmatpush1.bf16.msra.mxu1 %v1891_v8  ;;  %v1908_v19 = vld [vmem:[%s2894_s1 + $0x60] ss:$16 sps:$4 sm:$0xff]   ;;  %v1909_v20 = vld [vmem:[%s2894_s1 + $0x68] ss:$16 sps:$4 sm:$0xff]   ;;  %v1910_v21 = vld [vmem:[%s2894_s1 + $0x44] ss:$16 sps:$4 sm:$0xff]  }
   0x8   :  { %249 = vmatprep.subr.bf16.mxu0 %v1892_v9  ;;  %322 = vmatprep.subr.bf16.mxu1 %v1894_v10  ;;  %v1912_v22 = vld [vmem:[%s2894_s1 + $0x4c] ss:$16 sps:$4 sm:$0xff]   ;;  %v1914_v23 = vld [vmem:[%s2894_s1 + $0x40] ss:$16 sps:$4 sm:$0xff]   ;;  %v1915_v24 = vld [vmem:[%s2894_s1 + $0x48] ss:$16 sps:$4 sm:$0xff]  }
   0x9   :  { %v1916_v25 = vld [vmem:[%s2894_s1 + $0x24] ss:$16 sps:$4 sm:$0xff]   ;;  %v1918_v26 = vld [vmem:[%s2894_s1 + $0x2c] ss:$16 sps:$4 sm:$0xff]   ;;  %v1920_v27 = vld [vmem:[%s2894_s1 + $0x20] ss:$16 sps:$4 sm:$0xff]  }
   0xa   :  { %v1921_v28 = vld [vmem:[%s2894_s1 + $0x28] ss:$16 sps:$4 sm:$0xff]   ;;  %v1922_v29 = vld [vmem:[%s2894_s1 + $0x4] ss:$16 sps:$4 sm:$0xff]   ;;  %v1924_v30 = vld [vmem:[%s2894_s1 + $0xc] ss:$16 sps:$4 sm:$0xff]  }
   0xb   :  { %250 = vmatpush1.bf16.msra.mxu0 %v1896_v11  ;;  %323 = vmatpush1.bf16.msra.mxu1 %v1897_v12  ;;  %v1926_v31 = vld [vmem:[%s2894_s1] ss:$16 sps:$4 sm:$0xff]   ;;  %v1927_v32 = vld [vmem:[%s2894_s1 + $0x8] ss:$16 sps:$4 sm:$0xff]   ;;  %v2234_v33 = vld [vmem:[%s2896_s2 + $0xe4] ss:$16 sps:$4 sm:$0xff]  }
   0xc   :  { %251 = vmatprep.subr.bf16.mxu0 %v1898_v13  ;;  %324 = vmatprep.subr.bf16.mxu1 %v1900_v14  ;;  %v2239_v34 = vld [vmem:[%s2896_s2 + $0xec] ss:$16 sps:$4 sm:$0xff]   ;;  %v1928_v35 = vld [vmem:[%s2895_s0] sm:$0xff]   ;;  %v2252_v37 = vld [vmem:[%s2896_s2 + $0xe8] ss:$16 sps:$4 sm:$0xff]  }
   0xd   :  { %v2247_v36 = vld [vmem:[%s2896_s2 + $0xe0] ss:$16 sps:$4 sm:$0xff]   ;;  %v2259_v38 = vld [vmem:[%s2896_s2 + $0xc4] ss:$16 sps:$4 sm:$0xff]   ;;  %v2264_v39 = vld [vmem:[%s2896_s2 + $0xcc] ss:$16 sps:$4 sm:$0xff]  }
   0xe   :  { %v2269_v40 = vld [vmem:[%s2896_s2 + $0xc0] ss:$16 sps:$4 sm:$0xff]   ;;  %v2276_v41 = vld [vmem:[%s2896_s2 + $0xc8] ss:$16 sps:$4 sm:$0xff]   ;;  %v2283_v42 = vld [vmem:[%s2896_s2 + $0xa4] ss:$16 sps:$4 sm:$0xff]  }
   0xf   :  { %252 = vmatpush1.bf16.msra.mxu0 %v1902_v15  ;;  %325 = vmatpush1.bf16.msra.mxu1 %v1903_v16  ;;  %v2288_v43 = vld [vmem:[%s2896_s2 + $0xac] ss:$16 sps:$4 sm:$0xff]   ;;  %v2298_v45 = vld [vmem:[%s2896_s2 + $0xa0] ss:$16 sps:$4 sm:$0xff]   ;;  %v2303_v46 = vld [vmem:[%s2896_s2 + $0xa8] ss:$16 sps:$4 sm:$0xff]  }
  0x10   :  { %253 = vmatprep.subr.bf16.mxu0 %v1904_v17  ;;  %326 = vmatprep.subr.bf16.mxu1 %v1906_v18  ;;  %v1941_v44 = vld [vmem:[%s2895_s0 + $0x8] sm:$0xff]   ;;  %v2310_v47 = vld [vmem:[%s2896_s2 + $0x84] ss:$16 sps:$4 sm:$0xff]   ;;  %v2322_v49 = vld [vmem:[%s2896_s2 + $0x80] ss:$16 sps:$4 sm:$0xff]  }
  0x11   :  { %v2317_v48 = vld [vmem:[%s2896_s2 + $0x8c] ss:$16 sps:$4 sm:$0xff]   ;;  %v2327_v50 = vld [vmem:[%s2896_s2 + $0x88] ss:$16 sps:$4 sm:$0xff]   ;;  %v2334_v51 = vld [vmem:[%s2896_s2 + $0x64] ss:$16 sps:$4 sm:$0xff]  }
  0x12   :  { %v2341_v52 = vld [vmem:[%s2896_s2 + $0x6c] ss:$16 sps:$4 sm:$0xff]   ;;  %v1954_v53 = vld [vmem:[%s2895_s0 + $0x10] sm:$0xff]   ;;  %v2358_v55 = vld [vmem:[%s2896_s2 + $0x68] ss:$16 sps:$4 sm:$0xff]  }
  0x13   :  { %254 = vmatpush1.bf16.msra.mxu0 %v1908_v19  ;;  %327 = vmatpush1.bf16.msra.mxu1 %v1909_v20  ;;  %v2353_v54 = vld [vmem:[%s2896_s2 + $0x60] ss:$16 sps:$4 sm:$0xff]   ;;  %v2365_v56 = vld [vmem:[%s2896_s2 + $0x44] ss:$16 sps:$4 sm:$0xff]   ;;  %v2370_v57 = vld [vmem:[%s2896_s2 + $0x4c] ss:$16 sps:$4 sm:$0xff]  }
  0x14   :  { %255 = vmatprep.subr.bf16.mxu0 %v1910_v21  ;;  %328 = vmatprep.subr.bf16.mxu1 %v1912_v22  ;;  %v2377_v58 = vld [vmem:[%s2896_s2 + $0x40] ss:$16 sps:$4 sm:$0xff]   ;;  %v2382_v59 = vld [vmem:[%s2896_s2 + $0x48] ss:$16 sps:$4 sm:$0xff]   ;;  %v2389_v60 = vld [vmem:[%s2896_s2 + $0x24] ss:$16 sps:$4 sm:$0xff]  }
  0x15   :  { %v2394_v61 = vld [vmem:[%s2896_s2 + $0x2c] ss:$16 sps:$4 sm:$0xff]   ;;  %v2406_v63 = vld [vmem:[%s2896_s2 + $0x20] ss:$16 sps:$4 sm:$0xff]   ;;  %v2411_v0 = vld [vmem:[%s2896_s2 + $0x28] ss:$16 sps:$4 sm:$0xff]  }
  0x16   :  { %v1967_v62 = vld [vmem:[%s2895_s0 + $0x18] sm:$0xff]   ;;  %v2418_v2 = vld [vmem:[%s2896_s2 + $0x4] ss:$16 sps:$4 sm:$0xff]   ;;  %v2430_v4 = vld [vmem:[%s2896_s2] ss:$16 sps:$4 sm:$0xff]  }
  0x17   :  { %256 = vmatpush1.bf16.msra.mxu0 %v1914_v23  ;;  %329 = vmatpush1.bf16.msra.mxu1 %v1915_v24  ;;  %v2423_v3 = vld [vmem:[%s2896_s2 + $0xc] ss:$16 sps:$4 sm:$0xff]   ;;  %v2435_v5 = vld [vmem:[%s2896_s2 + $0x8] ss:$16 sps:$4 sm:$0xff]  }
  0x18   :  { %257 = vmatprep.subr.bf16.mxu0 %v1916_v25  ;;  %330 = vmatprep.subr.bf16.mxu1 %v1918_v26 }
  0x1b   :  { %258 = vmatpush1.bf16.msra.mxu0 %v1920_v27  ;;  %331 = vmatpush1.bf16.msra.mxu1 %v1921_v28 }
  0x1c   :  { %259 = vmatprep.subr.bf16.mxu0 %v1922_v29  ;;  %332 = vmatprep.subr.bf16.mxu1 %v1924_v30 }
  0x1f   :  { %260 = vmatpush1.bf16.msra.mxu0 %v1926_v31  ;;  %333 = vmatpush1.bf16.msra.mxu1 %v1927_v32 }
  0x20   :  { %733 = vmatprep.subr.bf16.mxu0 %v2234_v33  ;;  %774 = vmatprep.subr.bf16.mxu1 %v2239_v34 }
  0x22   :  { %278 = vmatmul.mubr.bf16.vlgmr.msra.gmra.mxu0 %v1928_v35  ;;  %351 = vmatmul.mubr.bf16.vlgmr.msra.gmra.mxu1 %v1928_v35 }
  0x23   :  { %734 = vmatpush1.bf16.msra.mxu0 %v2247_v36  ;;  %775 = vmatpush1.bf16.msra.mxu1 %v2252_v37 }
  0x24   :  { %735 = vmatprep.subr.bf16.mxu0 %v2259_v38  ;;  %776 = vmatprep.subr.bf16.mxu1 %v2264_v39 }
  0x25   :  { %287 = vmatprep.mubr.bf16.mxu0 %v2900_v1  ;;  %360 = vmatprep.mubr.bf16.mxu1 %v2900_v1 }
  0x27   :  { %736 = vmatpush1.bf16.msra.mxu0 %v2269_v40  ;;  %777 = vmatpush1.bf16.msra.mxu1 %v2276_v41 }
  0x28   :  { %737 = vmatprep.subr.bf16.mxu0 %v2283_v42  ;;  %778 = vmatprep.subr.bf16.mxu1 %v2288_v43 }
  0x2a   :  { %288 = vmatmul.mubr.bf16.gmra.mxu0 %v1941_v44  ;;  %361 = vmatmul.mubr.bf16.gmra.mxu1 %v1941_v44 }
  0x2b   :  { %738 = vmatpush1.bf16.msra.mxu0 %v2298_v45  ;;  %779 = vmatpush1.bf16.msra.mxu1 %v2303_v46 }
  0x2c   :  { %739 = vmatprep.subr.bf16.mxu0 %v2310_v47  ;;  %780 = vmatprep.subr.bf16.mxu1 %v2317_v48 }
  0x2d   :  { %297 = vmatprep.mubr.bf16.mxu0 %v2900_v1  ;;  %370 = vmatprep.mubr.bf16.mxu1 %v2900_v1 }
  0x2f   :  { %740 = vmatpush1.bf16.msra.mxu0 %v2322_v49  ;;  %781 = vmatpush1.bf16.msra.mxu1 %v2327_v50 }
  0x30   :  { %741 = vmatprep.subr.bf16.mxu0 %v2334_v51  ;;  %782 = vmatprep.subr.bf16.mxu1 %v2341_v52 }
  0x32   :  { %298 = vmatmul.mubr.bf16.gmra.mxu0 %v1954_v53  ;;  %371 = vmatmul.mubr.bf16.gmra.mxu1 %v1954_v53 }
  0x33   :  { %742 = vmatpush1.bf16.msra.mxu0 %v2353_v54  ;;  %783 = vmatpush1.bf16.msra.mxu1 %v2358_v55 }
  0x34   :  { %743 = vmatprep.subr.bf16.mxu0 %v2365_v56  ;;  %784 = vmatprep.subr.bf16.mxu1 %v2370_v57 }
  0x35   :  { %307 = vmatprep.mubr.bf16.mxu0 %v2900_v1  ;;  %380 = vmatprep.mubr.bf16.mxu1 %v2900_v1 }
  0x37   :  { %744 = vmatpush1.bf16.msra.mxu0 %v2377_v58  ;;  %785 = vmatpush1.bf16.msra.mxu1 %v2382_v59 }
  0x38   :  { %745 = vmatprep.subr.bf16.mxu0 %v2389_v60  ;;  %786 = vmatprep.subr.bf16.mxu1 %v2394_v61 }
  0x3a   :  { %308 = vmatmul.mubr.bf16.gmra.mxu0 %v1967_v62  ;;  %381 = vmatmul.mubr.bf16.gmra.mxu1 %v1967_v62 }
  0x3b   :  { %746 = vmatpush1.bf16.msra.mxu0 %v2406_v63  ;;  %787 = vmatpush1.bf16.msra.mxu1 %v2411_v0 }
  0x3c   :  { %747 = vmatprep.subr.bf16.mxu0 %v2418_v2  ;;  %788 = vmatprep.subr.bf16.mxu1 %v2423_v3 }
  0x3d   :  { %765 = vmatprep.mubr.bf16.mxu0 %v2900_v1  ;;  %806 = vmatprep.mubr.bf16.mxu1 %v2900_v1 }
  0x3f   :  { %748 = vmatpush1.bf16.msra.mxu0 %v2430_v4  ;;  %789 = vmatpush1.bf16.msra.mxu1 %v2435_v5 }
  0x40   :  { %845 = vmatprep.subr.bf16.mxu0 %v2234_v33  ;;  %886 = vmatprep.subr.bf16.mxu1 %v2239_v34 }
  0x42   :  { %766 = vmatmul.mubr.bf16.vlgmr.msra.gmra.mxu0 %v2900_v1  ;;  %807 = vmatmul.mubr.bf16.vlgmr.msra.gmra.mxu1 %v2900_v1 }
  0x43   :  { %846 = vmatpush1.bf16.msra.mxu0 %v2247_v36  ;;  %887 = vmatpush1.bf16.msra.mxu1 %v2252_v37 }
  0x44   :  { %847 = vmatprep.subr.bf16.mxu0 %v2259_v38  ;;  %888 = vmatprep.subr.bf16.mxu1 %v2264_v39 }
  0x45   :  { %877 = vmatprep.mubr.bf16.mxu0 %v2900_v1  ;;  %918 = vmatprep.mubr.bf16.mxu1 %v2900_v1 }
  0x47   :  { %848 = vmatpush1.bf16.msra.mxu0 %v2269_v40  ;;  %889 = vmatpush1.bf16.msra.mxu1 %v2276_v41 }
  0x48   :  { %849 = vmatprep.subr.bf16.mxu0 %v2283_v42  ;;  %890 = vmatprep.subr.bf16.mxu1 %v2288_v43 }
  0x4b   :  { %850 = vmatpush1.bf16.msra.mxu0 %v2298_v45  ;;  %891 = vmatpush1.bf16.msra.mxu1 %v2303_v46 }
  0x4c   :  { %851 = vmatprep.subr.bf16.mxu0 %v2310_v47  ;;  %892 = vmatprep.subr.bf16.mxu1 %v2317_v48 }
  0x4f   :  { %852 = vmatpush1.bf16.msra.mxu0 %v2322_v49  ;;  %893 = vmatpush1.bf16.msra.mxu1 %v2327_v50 }
  0x50   :  { %853 = vmatprep.subr.bf16.mxu0 %v2334_v51  ;;  %894 = vmatprep.subr.bf16.mxu1 %v2341_v52 }
  0x53   :  { %854 = vmatpush1.bf16.msra.mxu0 %v2353_v54  ;;  %895 = vmatpush1.bf16.msra.mxu1 %v2358_v55 }
  0x54   :  { %855 = vmatprep.subr.bf16.mxu0 %v2365_v56  ;;  %896 = vmatprep.subr.bf16.mxu1 %v2370_v57 }
  0x57   :  { %856 = vmatpush1.bf16.msra.mxu0 %v2377_v58  ;;  %897 = vmatpush1.bf16.msra.mxu1 %v2382_v59 }
  0x58   :  { %857 = vmatprep.subr.bf16.mxu0 %v2389_v60  ;;  %898 = vmatprep.subr.bf16.mxu1 %v2394_v61 }
  0x5b   :  { %858 = vmatpush1.bf16.msra.mxu0 %v2406_v63  ;;  %899 = vmatpush1.bf16.msra.mxu1 %v2411_v0 }
  0x5c   :  { %859 = vmatprep.subr.bf16.mxu0 %v2418_v2  ;;  %900 = vmatprep.subr.bf16.mxu1 %v2423_v3 }
  0x5f   :  { %860 = vmatpush1.bf16.msra.mxu0 %v2430_v4  ;;  %901 = vmatpush1.bf16.msra.mxu1 %v2435_v5 }
  0x60   :  { %957 = vmatprep.subr.bf16.mxu0 %v2234_v33  ;;  %998 = vmatprep.subr.bf16.mxu1 %v2239_v34 }
  0xe2   :  { %v279_v6 = vpop.f32.mrf.mxu0  ;;  %v352_v7 = vpop.f32.mrf.mxu1 }
  0xe4   :  { %v281_v8 = vpop.f32.mrf.mxu0  ;;  %v354_v9 = vpop.f32.mrf.mxu1 }
  0xe6   :  { %v283_v10 = vpop.f32.mrf.mxu0  ;;  %v356_v11 = vpop.f32.mrf.mxu1 }
  0xe8   :  { %v285_v12 = vpop.f32.mrf.mxu0  ;;  %v358_v13 = vpop.f32.mrf.mxu1 }
  0xe9   :  { %v2481_v14 = vpack.c.bf16 %v285_v12, %v283_v10  ;;  %v2483_v15 = vpack.c.bf16 %v358_v13, %v356_v11 }
  0xea   :  { %v289_v16 = vpop.f32.mrf.mxu0  ;;  %v362_v17 = vpop.f32.mrf.mxu1 }
  0xec   :  { %v291_v18 = vpop.f32.mrf.mxu0  ;;  %v364_v19 = vpop.f32.mrf.mxu1 }
  0xed   :  { %v2485_v20 = vpack.c.bf16 %v291_v18, %v289_v16  ;;  %v2487_v21 = vpack.c.bf16 %v364_v19, %v362_v17  ;;  %v1832_v19 = vpack.c.bf16 %v281_v8, %v279_v6 }
  0xee   :  { %v293_v22 = vpop.f32.mrf.mxu0  ;;  %v366_v23 = vpop.f32.mrf.mxu1 }
  0xf0   :  { %v295_v24 = vpop.f32.mrf.mxu0  ;;  %v368_v25 = vpop.f32.mrf.mxu1 }
  0xf1   :  { %v2489_v26 = vpack.c.bf16 %v295_v24, %v293_v22  ;;  %v2491_v27 = vpack.c.bf16 %v368_v25, %v366_v23 }
  0xf2   :  { %v299_v28 = vpop.f32.mrf.mxu0  ;;  %v372_v29 = vpop.f32.mrf.mxu1 }
  0xf4   :  { %v301_v30 = vpop.f32.mrf.mxu0  ;;  %v374_v31 = vpop.f32.mrf.mxu1 }
  0xf5   :  { %v2493_v32 = vpack.c.bf16 %v301_v30, %v299_v28  ;;  %v2495_v35 = vpack.c.bf16 %v374_v31, %v372_v29 }
  0xf6   :  { %v303_v44 = vpop.f32.mrf.mxu0  ;;  %v376_v53 = vpop.f32.mrf.mxu1 }
  0xf8   :  { %v305_v62 = vpop.f32.mrf.mxu0  ;;  %v378_v10 = vpop.f32.mrf.mxu1 }
  0xf9   :  { %v2497_v11 = vpack.c.bf16 %v305_v62, %v303_v44  ;;  %v2499_v12 = vpack.c.bf16 %v378_v10, %v376_v53  ;;  %v569_v44 = vunpack.c.l.bf16 %v1832_v19  ;;  %v1833_v10 = vpack.c.bf16 %v354_v9, %v352_v7 }
  0xfa   :  { %v309_v13 = vpop.f32.mrf.mxu0  ;;  %v382_v16 = vpop.f32.mrf.mxu1 }
  0xfb   :  { %2907 = vst [vmem:[#allocation3_spill] sm:$0xff] %v2497_v11  ;;  %2908 = vst [vmem:[#allocation4_spill] sm:$0xff] %v2499_v12  ;;  %v570_v12 = vunpack.c.h.bf16 %v1832_v19 }
  0xfc   :  { %v311_v17 = vpop.f32.mrf.mxu0  ;;  %v384_v18 = vpop.f32.mrf.mxu1 }
  0xfd   :  { %v2501_v22 = vpack.c.bf16 %v311_v17, %v309_v13  ;;  %v2503_v23 = vpack.c.bf16 %v384_v18, %v382_v16  ;;  %v571_v18 = vunpack.c.l.bf16 %v1833_v10 }
  0xfe   :  { %v313_v24 = vpop.f32.mrf.mxu0  ;;  %v386_v25 = vpop.f32.mrf.mxu1 }
  0xff   :  { %2909 = vst [vmem:[#allocation5_spill] sm:$0xff] %v2501_v22  ;;  %2910 = vst [vmem:[#allocation6_spill] sm:$0xff] %v2503_v23 }
 0x100   :  { %v315_v28 = vpop.f32.mrf.mxu0  ;;  %v388_v29 = vpop.f32.mrf.mxu1 }
 0x101   :  { %v2505_v30 = vpack.c.bf16 %v315_v28, %v313_v24  ;;  %v2507_v31 = vpack.c.bf16 %v388_v29, %v386_v25  ;;  %v572_v25 = vunpack.c.h.bf16 %v1833_v10 }
 0x102   :  { %v767_v53 = vpop.f32.mrf.mxu0  ;;  %v808_v62 = vpop.f32.mrf.mxu1 }
 0x103   :  { %2911 = vst [vmem:[#allocation7_spill] sm:$0xff] %v2507_v31  ;;  %v815_v1 = vadd.f32 %v767_v53, %v569_v44  ;;  %v817_v28 = vadd.f32 %v808_v62, %v571_v18 }
 0x104   :  { %v769_v11 = vpop.f32.mrf.mxu0  ;;  %v810_v6 = vpop.f32.mrf.mxu1 }
 0x105   :  { %v819_v8 = vmul.f32 0.5, %v815_v1  ;;  %v816_v13 = vadd.f32 %v769_v11, %v570_v12  ;;  %v818_v29 = vadd.f32 %v810_v6, %v572_v25  ;;  %v841_v25 = vunpack.c.h.bf16 %v2481_v14 }
 0x106   :  { %v771_v16 = vpop.f32.mrf.mxu0  ;;  %v812_v17 = vpop.f32.mrf.mxu1 }
 0x107   :  { %1988 = vtanh.f32 %v819_v8  ;;  %v823_v23 = vmul.f32 0.5, %v816_v13  ;;  %v828_v31 = vmul.f32 0.5, %v818_v29  ;;  %v840_v17 = vunpack.c.l.bf16 %v2481_v14 }
 0x108   :  { %v772_v22 = vpop.f32.mrf.mxu0  ;;  %v813_v24 = vpop.f32.mrf.mxu1 }
 0x109   :  { %1990 = vtanh.f32 %v823_v23 }
 0x10a   :  { %1992 = vtanh.f32 %v817_v28 }
 0x10b   :  { %1994 = vtanh.f32 %v828_v31  ;;  %v2912_v31 = vmov 0  }
 0x114   :  { %v1989_v7 = vpop.eup %1988 }
 0x115   :  { %v821_v9 = vadd.f32 1.0, %v1989_v7 }
 0x116   :  { %v1991_v19 = vpop.eup %1990 }
 0x117   :  { %v822_v44 = vmul.f32 0.5, %v821_v9  ;;  %v825_v53 = vadd.f32 1.0, %v1991_v19  ;;  %v1993_v11 = vpop.eup %1992  ;;  %v842_v19 = vunpack.c.l.bf16 %v2483_v15 }
 0x118   :  { %v1995_v22 = vpop.eup %1994 }
 0x119   :  { %v826_v1 = vmul.f32 0.5, %v825_v53  ;;  %v833_v8 = vmul.f32 %v1993_v11, %v822_v44  ;;  %v830_v23 = vadd.f32 1.0, %v1995_v22 }
 0x11b   :  { %v832_v12 = vmul.f32 0.0, %v826_v1  ;;  %v831_v62 = vmul.f32 0.5, %v830_v23  ;;  %v843_v23 = vunpack.c.h.bf16 %v2483_v15 }
 0x11d   :  { %v2509_v16 = vadd.f32 %v833_v8, %v832_v12 }
 0x11f   :  { %1996 = vtanh.f32 %v2509_v16 }
 0x12c   :  { %v1997_v10 = vpop.eup %1996 }
 0x12d   :  { %v836_v6 = vmul.f32 %v1997_v10, %v831_v62 }
 0x12f   :  { %v844_v13 = vpack.c.bf16 %v836_v6, %v836_v6 }
 0x131   :  { %878 = vmatmul.mubr.bf16.vlgmr.msra.gmra.mxu0 %v844_v13  ;;  %919 = vmatmul.mubr.bf16.vlgmr.msra.gmra.mxu1 %v844_v13 }
 0x132   :  { %958 = vmatpush1.bf16.msra.mxu0 %v2247_v36  ;;  %999 = vmatpush1.bf16.msra.mxu1 %v2252_v37 }
 0x133   :  { %959 = vmatprep.subr.bf16.mxu0 %v2259_v38  ;;  %1000 = vmatprep.subr.bf16.mxu1 %v2264_v39 }
 0x134   :  { %989 = vmatprep.mubr.bf16.mxu0 %v2912_v31  ;;  %1030 = vmatprep.mubr.bf16.mxu1 %v2912_v31 }
 0x136   :  { %960 = vmatpush1.bf16.msra.mxu0 %v2269_v40  ;;  %1001 = vmatpush1.bf16.msra.mxu1 %v2276_v41 }
 0x137   :  { %961 = vmatprep.subr.bf16.mxu0 %v2283_v42  ;;  %1002 = vmatprep.subr.bf16.mxu1 %v2288_v43 }
 0x13a   :  { %962 = vmatpush1.bf16.msra.mxu0 %v2298_v45  ;;  %1003 = vmatpush1.bf16.msra.mxu1 %v2303_v46 }
 0x13b   :  { %963 = vmatprep.subr.bf16.mxu0 %v2310_v47  ;;  %1004 = vmatprep.subr.bf16.mxu1 %v2317_v48 }
 0x13e   :  { %964 = vmatpush1.bf16.msra.mxu0 %v2322_v49  ;;  %1005 = vmatpush1.bf16.msra.mxu1 %v2327_v50 }
 0x13f   :  { %965 = vmatprep.subr.bf16.mxu0 %v2334_v51  ;;  %1006 = vmatprep.subr.bf16.mxu1 %v2341_v52 }
 0x142   :  { %966 = vmatpush1.bf16.msra.mxu0 %v2353_v54  ;;  %1007 = vmatpush1.bf16.msra.mxu1 %v2358_v55 }
 0x143   :  { %967 = vmatprep.subr.bf16.mxu0 %v2365_v56  ;;  %1008 = vmatprep.subr.bf16.mxu1 %v2370_v57 }
 0x146   :  { %968 = vmatpush1.bf16.msra.mxu0 %v2377_v58  ;;  %1009 = vmatpush1.bf16.msra.mxu1 %v2382_v59 }
 0x147   :  { %969 = vmatprep.subr.bf16.mxu0 %v2389_v60  ;;  %1010 = vmatprep.subr.bf16.mxu1 %v2394_v61 }
 0x14a   :  { %970 = vmatpush1.bf16.msra.mxu0 %v2406_v63  ;;  %1011 = vmatpush1.bf16.msra.mxu1 %v2411_v0 }
 0x14b   :  { %971 = vmatprep.subr.bf16.mxu0 %v2418_v2  ;;  %1012 = vmatprep.subr.bf16.mxu1 %v2423_v3 }
 0x14e   :  { %972 = vmatpush1.bf16.msra.mxu0 %v2430_v4  ;;  %1013 = vmatpush1.bf16.msra.mxu1 %v2435_v5 }
 0x14f   :  { %1069 = vmatprep.subr.bf16.mxu0 %v2234_v33  ;;  %1110 = vmatprep.subr.bf16.mxu1 %v2239_v34 }
 0x1f1   :  { %v879_v18 = vpop.f32.mrf.mxu0  ;;  %v920_v24 = vpop.f32.mrf.mxu1 }
 0x1f2   :  { %v927_v28 = vadd.f32 %v879_v18, %v840_v17  ;;  %v929_v11 = vadd.f32 %v920_v24, %v842_v19 }
 0x1f3   :  { %v881_v29 = vpop.f32.mrf.mxu0  ;;  %v922_v7 = vpop.f32.mrf.mxu1 }
 0x1f4   :  { %v931_v9 = vmul.f32 0.5, %v927_v28  ;;  %v928_v44 = vadd.f32 %v881_v29, %v841_v25  ;;  %v930_v62 = vadd.f32 %v922_v7, %v843_v23 }
 0x1f5   :  { %v883_v53 = vpop.f32.mrf.mxu0  ;;  %v924_v1 = vpop.f32.mrf.mxu1 }
 0x1f6   :  { %1998 = vtanh.f32 %v931_v9  ;;  %v935_v12 = vmul.f32 0.5, %v928_v44  ;;  %v940_v10 = vmul.f32 0.5, %v930_v62 }
 0x1f7   :  { %v884_v8 = vpop.f32.mrf.mxu0  ;;  %v925_v22 = vpop.f32.mrf.mxu1 }
 0x1f8   :  { %2000 = vtanh.f32 %v935_v12  ;;  %v953_v22 = vunpack.c.h.bf16 %v2485_v20 }
 0x1f9   :  { %2002 = vtanh.f32 %v929_v11 }
 0x1fa   :  { %2004 = vtanh.f32 %v940_v10 }
 0x203   :  { %v1999_v14 = vpop.eup %1998 }
 0x204   :  { %v933_v6 = vadd.f32 1.0, %v1999_v14  ;;  %v954_v14 = vunpack.c.l.bf16 %v2487_v21 }
 0x205   :  { %v2001_v13 = vpop.eup %2000 }
 0x206   :  { %v934_v17 = vmul.f32 0.5, %v933_v6  ;;  %v937_v18 = vadd.f32 1.0, %v2001_v13  ;;  %v2003_v28 = vpop.eup %2002 }
 0x207   :  { %v2005_v19 = vpop.eup %2004 }
 0x208   :  { %v938_v25 = vmul.f32 0.5, %v937_v18  ;;  %v945_v29 = vmul.f32 %v2003_v28, %v934_v17  ;;  %v942_v44 = vadd.f32 1.0, %v2005_v19 }
 0x20a   :  { %v944_v24 = vmul.f32 %v938_v25, %v2509_v16  ;;  %v943_v15 = vmul.f32 0.5, %v942_v44  ;;  %v952_v16 = vunpack.c.l.bf16 %v2485_v20 }
 0x20c   :  { %v2551_v9 = vadd.f32 %v945_v29, %v944_v24  ;;  %v955_v24 = vunpack.c.h.bf16 %v2487_v21 }
 0x20e   :  { %2006 = vtanh.f32 %v2551_v9 }
 0x21b   :  { %v2007_v7 = vpop.eup %2006 }
 0x21c   :  { %v948_v53 = vmul.f32 %v2007_v7, %v943_v15 }
 0x21e   :  { %v956_v1 = vpack.c.bf16 %v948_v53, %v948_v53 }
 0x220   :  { %990 = vmatmul.mubr.bf16.vlgmr.msra.gmra.mxu0 %v956_v1  ;;  %1031 = vmatmul.mubr.bf16.vlgmr.msra.gmra.mxu1 %v956_v1 }
 0x221   :  { %1070 = vmatpush1.bf16.msra.mxu0 %v2247_v36  ;;  %1111 = vmatpush1.bf16.msra.mxu1 %v2252_v37 }
 0x222   :  { %1071 = vmatprep.subr.bf16.mxu0 %v2259_v38  ;;  %1112 = vmatprep.subr.bf16.mxu1 %v2264_v39 }
 0x223   :  { %1101 = vmatprep.mubr.bf16.mxu0 %v2912_v31  ;;  %1142 = vmatprep.mubr.bf16.mxu1 %v2912_v31 }
 0x225   :  { %1072 = vmatpush1.bf16.msra.mxu0 %v2269_v40  ;;  %1113 = vmatpush1.bf16.msra.mxu1 %v2276_v41 }
 0x226   :  { %1073 = vmatprep.subr.bf16.mxu0 %v2283_v42  ;;  %1114 = vmatprep.subr.bf16.mxu1 %v2288_v43 }
 0x229   :  { %1074 = vmatpush1.bf16.msra.mxu0 %v2298_v45  ;;  %1115 = vmatpush1.bf16.msra.mxu1 %v2303_v46 }
 0x22a   :  { %1075 = vmatprep.subr.bf16.mxu0 %v2310_v47  ;;  %1116 = vmatprep.subr.bf16.mxu1 %v2317_v48 }
 0x22d   :  { %1076 = vmatpush1.bf16.msra.mxu0 %v2322_v49  ;;  %1117 = vmatpush1.bf16.msra.mxu1 %v2327_v50 }
 0x22e   :  { %1077 = vmatprep.subr.bf16.mxu0 %v2334_v51  ;;  %1118 = vmatprep.subr.bf16.mxu1 %v2341_v52 }
 0x231   :  { %1078 = vmatpush1.bf16.msra.mxu0 %v2353_v54  ;;  %1119 = vmatpush1.bf16.msra.mxu1 %v2358_v55 }
 0x232   :  { %1079 = vmatprep.subr.bf16.mxu0 %v2365_v56  ;;  %1120 = vmatprep.subr.bf16.mxu1 %v2370_v57 }
 0x235   :  { %1080 = vmatpush1.bf16.msra.mxu0 %v2377_v58  ;;  %1121 = vmatpush1.bf16.msra.mxu1 %v2382_v59 }
 0x236   :  { %1081 = vmatprep.subr.bf16.mxu0 %v2389_v60  ;;  %1122 = vmatprep.subr.bf16.mxu1 %v2394_v61 }
 0x239   :  { %1082 = vmatpush1.bf16.msra.mxu0 %v2406_v63  ;;  %1123 = vmatpush1.bf16.msra.mxu1 %v2411_v0 }
 0x23a   :  { %1083 = vmatprep.subr.bf16.mxu0 %v2418_v2  ;;  %1124 = vmatprep.subr.bf16.mxu1 %v2423_v3 }
 0x23d   :  { %1084 = vmatpush1.bf16.msra.mxu0 %v2430_v4  ;;  %1125 = vmatpush1.bf16.msra.mxu1 %v2435_v5 }
 0x23e   :  { %1181 = vmatprep.subr.bf16.mxu0 %v2234_v33  ;;  %1222 = vmatprep.subr.bf16.mxu1 %v2239_v34 }
 0x2e0   :  { %v991_v11 = vpop.f32.mrf.mxu0  ;;  %v1032_v12 = vpop.f32.mrf.mxu1 }
 0x2e1   :  { %v1039_v8 = vadd.f32 %v991_v11, %v952_v16  ;;  %v1041_v18 = vadd.f32 %v1032_v12, %v954_v14 }
 0x2e2   :  { %v993_v23 = vpop.f32.mrf.mxu0  ;;  %v1034_v62 = vpop.f32.mrf.mxu1 }
 0x2e3   :  { %v1043_v10 = vmul.f32 0.5, %v1039_v8  ;;  %v1040_v6 = vadd.f32 %v993_v23, %v953_v22  ;;  %v1042_v19 = vadd.f32 %v1034_v62, %v955_v24 }
 0x2e4   :  { %v995_v13 = vpop.f32.mrf.mxu0  ;;  %v1036_v17 = vpop.f32.mrf.mxu1 }
 0x2e5   :  { %2008 = vtanh.f32 %v1043_v10  ;;  %v1047_v28 = vmul.f32 0.5, %v1040_v6  ;;  %v1052_v44 = vmul.f32 0.5, %v1042_v19  ;;  %v1066_v19 = vunpack.c.l.bf16 %v2491_v27 }
 0x2e6   :  { %v996_v25 = vpop.f32.mrf.mxu0  ;;  %v1037_v29 = vpop.f32.mrf.mxu1 }
 0x2e7   :  { %2010 = vtanh.f32 %v1047_v28  ;;  %v1065_v28 = vunpack.c.h.bf16 %v2489_v26 }
 0x2e8   :  { %2012 = vtanh.f32 %v1041_v18 }
 0x2e9   :  { %2014 = vtanh.f32 %v1052_v44 }
 0x2f2   :  { %v2009_v20 = vpop.eup %2008 }
 0x2f3   :  { %v1045_v15 = vadd.f32 1.0, %v2009_v20 }
 0x2f4   :  { %v2011_v7 = vpop.eup %2010 }
 0x2f5   :  { %v1046_v53 = vmul.f32 0.5, %v1045_v15  ;;  %v1049_v1 = vadd.f32 1.0, %v2011_v7  ;;  %v2013_v16 = vpop.eup %2012 }
 0x2f6   :  { %v2015_v23 = vpop.eup %2014 }
 0x2f7   :  { %v1050_v11 = vmul.f32 0.5, %v1049_v1  ;;  %v1057_v8 = vmul.f32 %v2013_v16, %v1046_v53  ;;  %v1054_v10 = vadd.f32 1.0, %v2015_v23 }
 0x2f9   :  { %v1056_v12 = vmul.f32 %v1050_v11, %v2551_v9  ;;  %v1055_v21 = vmul.f32 0.5, %v1054_v10  ;;  %v1064_v9 = vunpack.c.l.bf16 %v2489_v26  ;;  %v1067_v11 = vunpack.c.h.bf16 %v2491_v27 }
 0x2fb   :  { %v2593_v22 = vadd.f32 %v1057_v8, %v1056_v12 }
 0x2fd   :  { %2016 = vtanh.f32 %v2593_v22 }
 0x30a   :  { %v2017_v62 = vpop.eup %2016 }
 0x30b   :  { %v1060_v14 = vmul.f32 %v2017_v62, %v1055_v21 }
 0x30d   :  { %v1068_v6 = vpack.c.bf16 %v1060_v14, %v1060_v14 }
 0x30f   :  { %1102 = vmatmul.mubr.bf16.vlgmr.msra.gmra.mxu0 %v1068_v6  ;;  %1143 = vmatmul.mubr.bf16.vlgmr.msra.gmra.mxu1 %v1068_v6 }
 0x310   :  { %1182 = vmatpush1.bf16.msra.mxu0 %v2247_v36  ;;  %1223 = vmatpush1.bf16.msra.mxu1 %v2252_v37 }
 0x311   :  { %1183 = vmatprep.subr.bf16.mxu0 %v2259_v38  ;;  %1224 = vmatprep.subr.bf16.mxu1 %v2264_v39 }
 0x312   :  { %1213 = vmatprep.mubr.bf16.mxu0 %v2912_v31  ;;  %1254 = vmatprep.mubr.bf16.mxu1 %v2912_v31 }
 0x314   :  { %1184 = vmatpush1.bf16.msra.mxu0 %v2269_v40  ;;  %1225 = vmatpush1.bf16.msra.mxu1 %v2276_v41 }
 0x315   :  { %1185 = vmatprep.subr.bf16.mxu0 %v2283_v42  ;;  %1226 = vmatprep.subr.bf16.mxu1 %v2288_v43 }
 0x318   :  { %1186 = vmatpush1.bf16.msra.mxu0 %v2298_v45  ;;  %1227 = vmatpush1.bf16.msra.mxu1 %v2303_v46 }
 0x319   :  { %1187 = vmatprep.subr.bf16.mxu0 %v2310_v47  ;;  %1228 = vmatprep.subr.bf16.mxu1 %v2317_v48 }
 0x31c   :  { %1188 = vmatpush1.bf16.msra.mxu0 %v2322_v49  ;;  %1229 = vmatpush1.bf16.msra.mxu1 %v2327_v50 }
 0x31d   :  { %1189 = vmatprep.subr.bf16.mxu0 %v2334_v51  ;;  %1230 = vmatprep.subr.bf16.mxu1 %v2341_v52 }
 0x320   :  { %1190 = vmatpush1.bf16.msra.mxu0 %v2353_v54  ;;  %1231 = vmatpush1.bf16.msra.mxu1 %v2358_v55 }
 0x321   :  { %1191 = vmatprep.subr.bf16.mxu0 %v2365_v56  ;;  %1232 = vmatprep.subr.bf16.mxu1 %v2370_v57 }
 0x324   :  { %1192 = vmatpush1.bf16.msra.mxu0 %v2377_v58  ;;  %1233 = vmatpush1.bf16.msra.mxu1 %v2382_v59 }
 0x325   :  { %1193 = vmatprep.subr.bf16.mxu0 %v2389_v60  ;;  %1234 = vmatprep.subr.bf16.mxu1 %v2394_v61 }
 0x328   :  { %1194 = vmatpush1.bf16.msra.mxu0 %v2406_v63  ;;  %1235 = vmatpush1.bf16.msra.mxu1 %v2411_v0 }
 0x329   :  { %1195 = vmatprep.subr.bf16.mxu0 %v2418_v2  ;;  %1236 = vmatprep.subr.bf16.mxu1 %v2423_v3 }
 0x32c   :  { %1196 = vmatpush1.bf16.msra.mxu0 %v2430_v4  ;;  %1237 = vmatpush1.bf16.msra.mxu1 %v2435_v5 }
 0x32d   :  { %1293 = vmatprep.subr.bf16.mxu0 %v2234_v33  ;;  %1334 = vmatprep.subr.bf16.mxu1 %v2239_v34 }
 0x3cf   :  { %v1103_v13 = vpop.f32.mrf.mxu0  ;;  %v1144_v17 = vpop.f32.mrf.mxu1 }
 0x3d0   :  { %v1151_v18 = vadd.f32 %v1103_v13, %v1064_v9  ;;  %v1153_v7 = vadd.f32 %v1144_v17, %v1066_v19 }
 0x3d1   :  { %v1105_v25 = vpop.f32.mrf.mxu0  ;;  %v1146_v29 = vpop.f32.mrf.mxu1 }
 0x3d2   :  { %v1155_v24 = vmul.f32 0.5, %v1151_v18  ;;  %v1152_v44 = vadd.f32 %v1105_v25, %v1065_v28  ;;  %v1154_v8 = vadd.f32 %v1146_v29, %v1067_v11 }
 0x3d3   :  { %v1107_v20 = vpop.f32.mrf.mxu0  ;;  %v1148_v15 = vpop.f32.mrf.mxu1 }
 0x3d4   :  { %2018 = vtanh.f32 %v1155_v24  ;;  %v1159_v53 = vmul.f32 0.5, %v1152_v44  ;;  %v1164_v12 = vmul.f32 0.5, %v1154_v8  ;;  %v1179_v20 = vunpack.c.h.bf16 %v2495_v35 }
 0x3d5   :  { %v1108_v1 = vpop.f32.mrf.mxu0  ;;  %v1149_v16 = vpop.f32.mrf.mxu1 }
 0x3d6   :  { %2020 = vtanh.f32 %v1159_v53 }
 0x3d7   :  { %2022 = vtanh.f32 %v1153_v7 }
 0x3d8   :  { %2024 = vtanh.f32 %v1164_v12 }
 0x3e1   :  { %v2019_v26 = vpop.eup %2018 }
 0x3e2   :  { %v1157_v23 = vadd.f32 1.0, %v2019_v26 }
 0x3e3   :  { %v2021_v10 = vpop.eup %2020 }
 0x3e4   :  { %v1158_v21 = vmul.f32 0.5, %v1157_v23  ;;  %v1161_v62 = vadd.f32 1.0, %v2021_v10  ;;  %v2023_v14 = vpop.eup %2022 }
 0x3e5   :  { %v2025_v18 = vpop.eup %2024 }
 0x3e6   :  { %v1162_v6 = vmul.f32 0.5, %v1161_v62  ;;  %v1169_v9 = vmul.f32 %v2023_v14, %v1158_v21  ;;  %v1166_v28 = vadd.f32 1.0, %v2025_v18  ;;  %v2695_v18 = vld [vmem:[%s2896_s2 + $0xc4] ss:$16 sps:$4 sm:$0xff]  }
 0x3e8   :  { %v1168_v13 = vmul.f32 %v1162_v6, %v2593_v22  ;;  %v1167_v27 = vmul.f32 0.5, %v1166_v28  ;;  %v2701_v28 = vld [vmem:[%s2896_s2 + $0xcc] ss:$16 sps:$4 sm:$0xff]  }
 0x3ea   :  { %v2635_v17 = vadd.f32 %v1169_v9, %v1168_v13  ;;  %v2683_v13 = vld [vmem:[%s2896_s2 + $0xe0] ss:$16 sps:$4 sm:$0xff]  }
 0x3ec   :  { %2026 = vtanh.f32 %v2635_v17 }
 0x3f9   :  { %v2027_v25 = vpop.eup %2026 }
 0x3fa   :  { %v1172_v29 = vmul.f32 %v2027_v25, %v1167_v27  ;;  %v2709_v27 = vld [vmem:[%s2896_s2 + $0xc0] ss:$16 sps:$4 sm:$0xff]   ;;  %v2715_v25 = vld [vmem:[%s2896_s2 + $0xc8] ss:$16 sps:$4 sm:$0xff]  }
 0x3fc   :  { %v1180_v24 = vpack.c.bf16 %v1172_v29, %v1172_v29  ;;  %v2721_v29 = vld [vmem:[%s2896_s2 + $0xa4] ss:$16 sps:$4 sm:$0xff]  }
 0x3fe   :  { %1214 = vmatmul.mubr.bf16.vlgmr.msra.gmra.mxu0 %v1180_v24  ;;  %1255 = vmatmul.mubr.bf16.vlgmr.msra.gmra.mxu1 %v1180_v24  ;;  %v2727_v24 = vld [vmem:[%s2896_s2 + $0xac] ss:$16 sps:$4 sm:$0xff]  }
 0x3ff   :  { %1294 = vmatpush1.bf16.msra.mxu0 %v2247_v36  ;;  %1335 = vmatpush1.bf16.msra.mxu1 %v2252_v37  ;;  %v1176_v36 = vunpack.c.l.bf16 %v2493_v32 }
 0x400   :  { %1295 = vmatprep.subr.bf16.mxu0 %v2259_v38  ;;  %1336 = vmatprep.subr.bf16.mxu1 %v2264_v39 }
 0x401   :  { %1325 = vmatprep.mubr.bf16.mxu0 %v2912_v31  ;;  %1366 = vmatprep.mubr.bf16.mxu1 %v2912_v31 }
 0x403   :  { %1296 = vmatpush1.bf16.msra.mxu0 %v2269_v40  ;;  %1337 = vmatpush1.bf16.msra.mxu1 %v2276_v41  ;;  %v1177_v40 = vunpack.c.h.bf16 %v2493_v32 }
 0x404   :  { %1297 = vmatprep.subr.bf16.mxu0 %v2283_v42  ;;  %1338 = vmatprep.subr.bf16.mxu1 %v2288_v43 }
 0x407   :  { %1298 = vmatpush1.bf16.msra.mxu0 %v2298_v45  ;;  %1339 = vmatpush1.bf16.msra.mxu1 %v2303_v46  ;;  %v1178_v45 = vunpack.c.l.bf16 %v2495_v35 }
 0x408   :  { %1299 = vmatprep.subr.bf16.mxu0 %v2310_v47  ;;  %1340 = vmatprep.subr.bf16.mxu1 %v2317_v48 }
 0x40b   :  { %1300 = vmatpush1.bf16.msra.mxu0 %v2322_v49  ;;  %1341 = vmatpush1.bf16.msra.mxu1 %v2327_v50 }
 0x40c   :  { %1301 = vmatprep.subr.bf16.mxu0 %v2334_v51  ;;  %1342 = vmatprep.subr.bf16.mxu1 %v2341_v52 }
 0x40f   :  { %1302 = vmatpush1.bf16.msra.mxu0 %v2353_v54  ;;  %1343 = vmatpush1.bf16.msra.mxu1 %v2358_v55 }
 0x410   :  { %1303 = vmatprep.subr.bf16.mxu0 %v2365_v56  ;;  %1344 = vmatprep.subr.bf16.mxu1 %v2370_v57 }
 0x413   :  { %1304 = vmatpush1.bf16.msra.mxu0 %v2377_v58  ;;  %1345 = vmatpush1.bf16.msra.mxu1 %v2382_v59 }
 0x414   :  { %1305 = vmatprep.subr.bf16.mxu0 %v2389_v60  ;;  %1346 = vmatprep.subr.bf16.mxu1 %v2394_v61 }
 0x417   :  { %1306 = vmatpush1.bf16.msra.mxu0 %v2406_v63  ;;  %1347 = vmatpush1.bf16.msra.mxu1 %v2411_v0 }
 0x418   :  { %1307 = vmatprep.subr.bf16.mxu0 %v2418_v2  ;;  %1348 = vmatprep.subr.bf16.mxu1 %v2423_v3 }
 0x41b   :  { %1308 = vmatpush1.bf16.msra.mxu0 %v2430_v4  ;;  %1349 = vmatpush1.bf16.msra.mxu1 %v2435_v5 }
 0x41c   :  { %1405 = vmatprep.subr.bf16.mxu0 %v2234_v33  ;;  %1446 = vmatprep.subr.bf16.mxu1 %v2239_v34 }
 0x4be   :  { %v1215_v37 = vpop.f32.mrf.mxu0  ;;  %v1256_v38 = vpop.f32.mrf.mxu1 }
 0x4bf   :  { %v1263_v39 = vadd.f32 %v1215_v37, %v1176_v36  ;;  %v1265_v19 = vadd.f32 %v1256_v38, %v1178_v45  ;;  %v2733_v36 = vld [vmem:[%s2896_s2 + $0xa0] ss:$16 sps:$4 sm:$0xff]   ;;  %v2739_v37 = vld [vmem:[%s2896_s2 + $0xa8] ss:$16 sps:$4 sm:$0xff]   ;;  %v2745_v38 = vld [vmem:[%s2896_s2 + $0x84] ss:$16 sps:$4 sm:$0xff]  }
 0x4c0   :  { %v1217_v41 = vpop.f32.mrf.mxu0  ;;  %v1258_v42 = vpop.f32.mrf.mxu1 }
 0x4c1   :  { %v1267_v43 = vmul.f32 0.5, %v1263_v39  ;;  %v1264_v46 = vadd.f32 %v1217_v41, %v1177_v40  ;;  %v1266_v15 = vadd.f32 %v1258_v42, %v1179_v20 }
 0x4c2   :  { %v1219_v47 = vpop.f32.mrf.mxu0  ;;  %v1260_v22 = vpop.f32.mrf.mxu1 }
 0x4c3   :  { %2028 = vtanh.f32 %v1267_v43  ;;  %v1271_v33 = vmul.f32 0.5, %v1264_v46  ;;  %v1276_v7 = vmul.f32 0.5, %v1266_v15 }
 0x4c4   :  { %v1220_v44 = vpop.f32.mrf.mxu0  ;;  %v1261_v34 = vpop.f32.mrf.mxu1 }
 0x4c5   :  { %2030 = vtanh.f32 %v1271_v33 }
 0x4c6   :  { %2032 = vtanh.f32 %v1265_v19 }
 0x4c7   :  { %2034 = vtanh.f32 %v1276_v7 }
 0x4d0   :  { %v2029_v32 = vpop.eup %2028 }
 0x4d1   :  { %v1269_v53 = vadd.f32 1.0, %v2029_v32 }
 0x4d2   :  { %v2031_v1 = vpop.eup %2030 }
 0x4d3   :  { %v1270_v16 = vmul.f32 0.5, %v1269_v53  ;;  %v1273_v11 = vadd.f32 1.0, %v2031_v1  ;;  %v2033_v8 = vpop.eup %2032 }
 0x4d4   :  { %v2035_v21 = vpop.eup %2034 }
 0x4d5   :  { %v1274_v12 = vmul.f32 0.5, %v1273_v11  ;;  %v1281_v26 = vmul.f32 %v2033_v8, %v1270_v16  ;;  %v1278_v62 = vadd.f32 1.0, %v2035_v21  ;;  %v2081_v11 = vld [vmem:[%s2896_s2 + $0x8c] ss:$16 sps:$4 sm:$0xff]   ;;  %v2083_v8 = vld [vmem:[%s2896_s2 + $0x88] ss:$16 sps:$4 sm:$0xff]  }
 0x4d6   :  { %v2088_v21 = vld [vmem:[%s2896_s2 + $0x44] ss:$16 sps:$4 sm:$0xff]  }
 0x4d7   :  { %v1280_v23 = vmul.f32 %v1274_v12, %v2635_v17  ;;  %v1279_v35 = vmul.f32 0.5, %v1278_v62  ;;  %v2689_v17 = vld [vmem:[%s2896_s2 + $0xe8] ss:$16 sps:$4 sm:$0xff]   ;;  %v2084_v12 = vld [vmem:[%s2896_s2 + $0x64] ss:$16 sps:$4 sm:$0xff]  }
 0x4d8   :  { %v2089_v62 = vld [vmem:[%s2896_s2 + $0x4c] ss:$16 sps:$4 sm:$0xff]  }
 0x4d9   :  { %v2677_v10 = vadd.f32 %v1281_v26, %v1280_v23  ;;  %v2085_v26 = vld [vmem:[%s2896_s2 + $0x6c] ss:$16 sps:$4 sm:$0xff]   ;;  %v2086_v23 = vld [vmem:[%s2896_s2 + $0x60] ss:$16 sps:$4 sm:$0xff]  }
 0x4db   :  { %2036 = vtanh.f32 %v2677_v10 }
 0x4e8   :  { %v2037_v14 = vpop.eup %2036 }
 0x4e9   :  { %v1284_v6 = vmul.f32 %v2037_v14, %v1279_v35  ;;  %v2090_v35 = vld [vmem:[%s2896_s2 + $0x40] ss:$16 sps:$4 sm:$0xff]   ;;  %v2091_v14 = vld [vmem:[%s2896_s2 + $0x48] ss:$16 sps:$4 sm:$0xff]  }
 0x4eb   :  { %v1292_v9 = vpack.c.bf16 %v1284_v6, %v1284_v6  ;;  %v2092_v6 = vld [vmem:[%s2896_s2 + $0x24] ss:$16 sps:$4 sm:$0xff]  }
 0x4ed   :  { %1326 = vmatmul.mubr.bf16.vlgmr.msra.gmra.mxu0 %v1292_v9  ;;  %1367 = vmatmul.mubr.bf16.vlgmr.msra.gmra.mxu1 %v1292_v9  ;;  %v2093_v9 = vld [vmem:[%s2896_s2 + $0x2c] ss:$16 sps:$4 sm:$0xff]  }
 0x4ee   :  { %1406 = vmatpush1.bf16.msra.mxu0 %v2683_v13  ;;  %1447 = vmatpush1.bf16.msra.mxu1 %v2689_v17 }
 0x4ef   :  { %1407 = vmatprep.subr.bf16.mxu0 %v2695_v18  ;;  %1448 = vmatprep.subr.bf16.mxu1 %v2701_v28 }
 0x4f0   :  { %1437 = vmatprep.mubr.bf16.mxu0 %v2912_v31  ;;  %1478 = vmatprep.mubr.bf16.mxu1 %v2912_v31 }
 0x4f2   :  { %1408 = vmatpush1.bf16.msra.mxu0 %v2709_v27  ;;  %1449 = vmatpush1.bf16.msra.mxu1 %v2715_v25 }
 0x4f3   :  { %1409 = vmatprep.subr.bf16.mxu0 %v2721_v29  ;;  %1450 = vmatprep.subr.bf16.mxu1 %v2727_v24 }
 0x4f6   :  { %1410 = vmatpush1.bf16.msra.mxu0 %v2733_v36  ;;  %1451 = vmatpush1.bf16.msra.mxu1 %v2739_v37 }
 0x4f7   :  { %1411 = vmatprep.subr.bf16.mxu0 %v2745_v38  ;;  %1452 = vmatprep.subr.bf16.mxu1 %v2317_v48  ;;  %v2079_v48 = vld [vmem:[%s2896_s2 + $0xe4] ss:$16 sps:$4 sm:$0xff]  }
 0x4fa   :  { %1412 = vmatpush1.bf16.msra.mxu0 %v2322_v49  ;;  %1453 = vmatpush1.bf16.msra.mxu1 %v2327_v50  ;;  %v2080_v49 = vld [vmem:[%s2896_s2 + $0xec] ss:$16 sps:$4 sm:$0xff]   ;;  %v2913_v50 = vld [vmem:[#allocation3_spill] sm:$0xff] }
 0x4fb   :  { %1413 = vmatprep.subr.bf16.mxu0 %v2334_v51  ;;  %1454 = vmatprep.subr.bf16.mxu1 %v2341_v52  ;;  %v1288_v51 = vunpack.c.l.bf16 %v2913_v50 }
 0x4fe   :  { %1414 = vmatpush1.bf16.msra.mxu0 %v2353_v54  ;;  %1455 = vmatpush1.bf16.msra.mxu1 %v2358_v55 }
 0x4ff   :  { %1415 = vmatprep.subr.bf16.mxu0 %v2365_v56  ;;  %1456 = vmatprep.subr.bf16.mxu1 %v2370_v57  ;;  %v1289_v56 = vunpack.c.h.bf16 %v2913_v50 }
 0x502   :  { %1416 = vmatpush1.bf16.msra.mxu0 %v2377_v58  ;;  %1457 = vmatpush1.bf16.msra.mxu1 %v2382_v59 }
 0x503   :  { %1417 = vmatprep.subr.bf16.mxu0 %v2389_v60  ;;  %1458 = vmatprep.subr.bf16.mxu1 %v2394_v61  ;;  %v2914_v60 = vld [vmem:[#allocation4_spill] sm:$0xff] }
 0x504   :  { %v1290_v61 = vunpack.c.l.bf16 %v2914_v60  ;;  %v1291_v40 = vunpack.c.h.bf16 %v2914_v60 }
 0x506   :  { %1418 = vmatpush1.bf16.msra.mxu0 %v2406_v63  ;;  %1459 = vmatpush1.bf16.msra.mxu1 %v2411_v0 }
 0x507   :  { %1419 = vmatprep.subr.bf16.mxu0 %v2418_v2  ;;  %1460 = vmatprep.subr.bf16.mxu1 %v2423_v3 }
 0x50a   :  { %1420 = vmatpush1.bf16.msra.mxu0 %v2430_v4  ;;  %1461 = vmatpush1.bf16.msra.mxu1 %v2435_v5 }
 0x50b   :  { %1517 = vmatprep.subr.bf16.mxu0 %v2079_v48  ;;  %1558 = vmatprep.subr.bf16.mxu1 %v2080_v49 }
 0x5ad   :  { %v1327_v52 = vpop.f32.mrf.mxu0  ;;  %v1368_v54 = vpop.f32.mrf.mxu1 }
 0x5ae   :  { %v1375_v55 = vadd.f32 %v1327_v52, %v1288_v51  ;;  %v1377_v3 = vadd.f32 %v1368_v54, %v1290_v61  ;;  %v2916_v52 = vld [vmem:[#allocation6_spill] sm:$0xff] }
 0x5af   :  { %v1329_v57 = vpop.f32.mrf.mxu0  ;;  %v1370_v58 = vpop.f32.mrf.mxu1  ;;  %v1402_v54 = vunpack.c.l.bf16 %v2916_v52 }
 0x5b0   :  { %v1379_v59 = vmul.f32 0.5, %v1375_v55  ;;  %v1376_v63 = vadd.f32 %v1329_v57, %v1289_v56  ;;  %v1378_v41 = vadd.f32 %v1370_v58, %v1291_v40 }
 0x5b1   :  { %v1331_v0 = vpop.f32.mrf.mxu0  ;;  %v1372_v2 = vpop.f32.mrf.mxu1 }
 0x5b2   :  { %2038 = vtanh.f32 %v1379_v59  ;;  %v1383_v4 = vmul.f32 0.5, %v1376_v63  ;;  %v1388_v42 = vmul.f32 0.5, %v1378_v41  ;;  %v1403_v63 = vunpack.c.h.bf16 %v2916_v52 }
 0x5b3   :  { %v1332_v5 = vpop.f32.mrf.mxu0  ;;  %v1373_v39 = vpop.f32.mrf.mxu1 }
 0x5b4   :  { %2040 = vtanh.f32 %v1383_v4 }
 0x5b5   :  { %2042 = vtanh.f32 %v1377_v3 }
 0x5b6   :  { %2044 = vtanh.f32 %v1388_v42 }
 0x5bf   :  { %v2039_v43 = vpop.eup %2038 }
 0x5c0   :  { %v1381_v45 = vadd.f32 1.0, %v2039_v43 }
 0x5c1   :  { %v2041_v46 = vpop.eup %2040 }
 0x5c2   :  { %v1382_v47 = vmul.f32 0.5, %v1381_v45  ;;  %v1385_v22 = vadd.f32 1.0, %v2041_v46  ;;  %v2043_v19 = vpop.eup %2042 }
 0x5c3   :  { %v2045_v15 = vpop.eup %2044 }
 0x5c4   :  { %v1386_v33 = vmul.f32 0.5, %v1385_v22  ;;  %v1393_v44 = vmul.f32 %v2043_v19, %v1382_v47  ;;  %v1390_v7 = vadd.f32 1.0, %v2045_v15  ;;  %v1980_v15 = vld [vmem:[%s2897_s3 + $0x38] sm:$0xff]  }
 0x5c6   :  { %v1392_v34 = vmul.f32 %v1386_v33, %v2677_v10  ;;  %v1391_v32 = vmul.f32 0.5, %v1390_v7  ;;  %v2087_v10 = vld [vmem:[%s2896_s2 + $0x68] ss:$16 sps:$4 sm:$0xff]   ;;  %v2101_v7 = vmov 0.0  }
 0x5c8   :  { %v2778_v20 = vadd.f32 %v1393_v44, %v1392_v34 }
 0x5ca   :  { %2046 = vtanh.f32 %v2778_v20 }
 0x5d7   :  { %v2047_v53 = vpop.eup %2046 }
 0x5d8   :  { %v1396_v1 = vmul.f32 %v2047_v53, %v1391_v32  ;;  %v1982_v32 = vld [vmem:[%s2897_s3 + $0x28] sm:$0xff]   ;;  %v1983_v53 = vld [vmem:[%s2897_s3 + $0x20] sm:$0xff]  }
 0x5da   :  { %v1404_v16 = vpack.c.bf16 %v1396_v1, %v1396_v1  ;;  %v1984_v1 = vld [vmem:[%s2897_s3 + $0x18] sm:$0xff]  }
 0x5dc   :  { %1438 = vmatmul.mubr.bf16.vlgmr.msra.gmra.mxu0 %v1404_v16  ;;  %1479 = vmatmul.mubr.bf16.vlgmr.msra.gmra.mxu1 %v1404_v16  ;;  %v1985_v16 = vld [vmem:[%s2897_s3 + $0x10] sm:$0xff]  }
 0x5dd   :  { %1518 = vmatpush1.bf16.msra.mxu0 %v2683_v13  ;;  %1559 = vmatpush1.bf16.msra.mxu1 %v2689_v17  ;;  %v2094_v13 = vld [vmem:[%s2896_s2 + $0x20] ss:$16 sps:$4 sm:$0xff]   ;;  %v2095_v17 = vld [vmem:[%s2896_s2 + $0x28] ss:$16 sps:$4 sm:$0xff]  }
 0x5de   :  { %1519 = vmatprep.subr.bf16.mxu0 %v2695_v18  ;;  %1560 = vmatprep.subr.bf16.mxu1 %v2701_v28  ;;  %v2096_v18 = vld [vmem:[%s2896_s2 + $0x4] ss:$16 sps:$4 sm:$0xff]   ;;  %v2097_v28 = vld [vmem:[%s2896_s2 + $0xc] ss:$16 sps:$4 sm:$0xff]  }
 0x5df   :  { %1549 = vmatprep.mubr.bf16.mxu0 %v2912_v31  ;;  %1590 = vmatprep.mubr.bf16.mxu1 %v2912_v31  ;;  %v2082_v31 = vld [vmem:[%s2896_s2 + $0x80] ss:$16 sps:$4 sm:$0xff]  }
 0x5e1   :  { %1520 = vmatpush1.bf16.msra.mxu0 %v2709_v27  ;;  %1561 = vmatpush1.bf16.msra.mxu1 %v2715_v25  ;;  %v2098_v27 = vld [vmem:[%s2896_s2] ss:$16 sps:$4 sm:$0xff]   ;;  %v2099_v25 = vld [vmem:[%s2896_s2 + $0x8] ss:$16 sps:$4 sm:$0xff]  }
 0x5e2   :  { %1521 = vmatprep.subr.bf16.mxu0 %v2721_v29  ;;  %1562 = vmatprep.subr.bf16.mxu1 %v2727_v24  ;;  %v2915_v29 = vld [vmem:[#allocation5_spill] sm:$0xff] }
 0x5e3   :  { %v1400_v24 = vunpack.c.l.bf16 %v2915_v29  ;;  %v1401_v48 = vunpack.c.h.bf16 %v2915_v29 }
 0x5e5   :  { %1522 = vmatpush1.bf16.msra.mxu0 %v2733_v36  ;;  %1563 = vmatpush1.bf16.msra.mxu1 %v2739_v37 }
 0x5e6   :  { %1523 = vmatprep.subr.bf16.mxu0 %v2745_v38  ;;  %1564 = vmatprep.subr.bf16.mxu1 %v2081_v11  ;;  %v1986_v11 = vld [vmem:[%s2897_s3 + $0x8] sm:$0xff]  }
 0x5e9   :  { %1524 = vmatpush1.bf16.msra.mxu0 %v2082_v31  ;;  %1565 = vmatpush1.bf16.msra.mxu1 %v2083_v8  ;;  %v1987_v31 = vld [vmem:[%s2897_s3] sm:$0xff]   ;;  %v1512_v8 = vunpack.c.l.bf16 %v2505_v30 }
 0x5ea   :  { %1525 = vmatprep.subr.bf16.mxu0 %v2084_v12  ;;  %1566 = vmatprep.subr.bf16.mxu1 %v2085_v26 }
 0x5ed   :  { %1526 = vmatpush1.bf16.msra.mxu0 %v2086_v23  ;;  %1567 = vmatpush1.bf16.msra.mxu1 %v2087_v10  ;;  %v1513_v10 = vunpack.c.h.bf16 %v2505_v30 }
 0x5ee   :  { %1527 = vmatprep.subr.bf16.mxu0 %v2088_v21  ;;  %1568 = vmatprep.subr.bf16.mxu1 %v2089_v62 }
 0x5f1   :  { %1528 = vmatpush1.bf16.msra.mxu0 %v2090_v35  ;;  %1569 = vmatpush1.bf16.msra.mxu1 %v2091_v14  ;;  %v2917_v14 = vld [vmem:[#allocation7_spill] sm:$0xff] }
 0x5f2   :  { %1529 = vmatprep.subr.bf16.mxu0 %v2092_v6  ;;  %1570 = vmatprep.subr.bf16.mxu1 %v2093_v9  ;;  %v1514_v6 = vunpack.c.l.bf16 %v2917_v14  ;;  %v1515_v29 = vunpack.c.h.bf16 %v2917_v14 }
 0x5f5   :  { %1530 = vmatpush1.bf16.msra.mxu0 %v2094_v13  ;;  %1571 = vmatpush1.bf16.msra.mxu1 %v2095_v17 }
 0x5f6   :  { %1531 = vmatprep.subr.bf16.mxu0 %v2096_v18  ;;  %1572 = vmatprep.subr.bf16.mxu1 %v2097_v28 }
 0x5f9   :  { %1532 = vmatpush1.bf16.msra.mxu0 %v2098_v27  ;;  %1573 = vmatpush1.bf16.msra.mxu1 %v2099_v25 }
 0x5fa   :  { %1857 = vmatprep.subr.bf16.mxu0 %v2101_v7 }
 0x69c   :  { %v1439_v36 = vpop.f32.mrf.mxu0  ;;  %v1480_v37 = vpop.f32.mrf.mxu1 }
 0x69d   :  { %v1487_v38 = vadd.f32 %v1439_v36, %v1400_v24  ;;  %v1489_v58 = vadd.f32 %v1480_v37, %v1402_v54 }
 0x69e   :  { %v1441_v49 = vpop.f32.mrf.mxu0  ;;  %v1482_v50 = vpop.f32.mrf.mxu1 }
 0x69f   :  { %v1491_v51 = vmul.f32 0.5, %v1487_v38  ;;  %v1488_v55 = vadd.f32 %v1441_v49, %v1401_v48  ;;  %v1490_v0 = vadd.f32 %v1482_v50, %v1403_v63 }
 0x6a0   :  { %v1443_v56 = vpop.f32.mrf.mxu0  ;;  %v1484_v57 = vpop.f32.mrf.mxu1 }
 0x6a1   :  { %2048 = vtanh.f32 %v1491_v51  ;;  %v1495_v59 = vmul.f32 0.5, %v1488_v55  ;;  %v1500_v2 = vmul.f32 0.5, %v1490_v0  ;;  %v1823_v0 = vld [vmem:[%s2898_s4] ss:$0 sm:$0xff] }
 0x6a2   :  { %v1444_v60 = vpop.f32.mrf.mxu0  ;;  %v1485_v61 = vpop.f32.mrf.mxu1 }
 0x6a3   :  { %2050 = vtanh.f32 %v1495_v59 }
 0x6a4   :  { %2052 = vtanh.f32 %v1489_v58 }
 0x6a5   :  { %2054 = vtanh.f32 %v1500_v2 }
 0x6ae   :  { %v2049_v3 = vpop.eup %2048 }
 0x6af   :  { %v1493_v4 = vadd.f32 1.0, %v2049_v3 }
 0x6b0   :  { %v2051_v5 = vpop.eup %2050 }
 0x6b1   :  { %v1494_v39 = vmul.f32 0.5, %v1493_v4  ;;  %v1497_v40 = vadd.f32 1.0, %v2051_v5  ;;  %v2053_v41 = vpop.eup %2052 }
 0x6b2   :  { %v2055_v47 = vpop.eup %2054 }
 0x6b3   :  { %v1498_v42 = vmul.f32 0.5, %v1497_v40  ;;  %v1505_v43 = vmul.f32 %v2053_v41, %v1494_v39  ;;  %v1502_v22 = vadd.f32 1.0, %v2055_v47 }
 0x6b5   :  { %v1504_v45 = vmul.f32 %v1498_v42, %v2778_v20  ;;  %v1503_v19 = vmul.f32 0.5, %v1502_v22  ;;  %v1981_v20 = vld [vmem:[%s2897_s3 + $0x30] sm:$0xff]  }
 0x6b7   :  { %v2856_v46 = vadd.f32 %v1505_v43, %v1504_v45 }
 0x6b9   :  { %2056 = vtanh.f32 %v2856_v46 }
 0x6c6   :  { %v2057_v33 = vpop.eup %2056 }
 0x6c7   :  { %v1508_v44 = vmul.f32 %v2057_v33, %v1503_v19 }
 0x6c9   :  { %v1516_v34 = vpack.c.bf16 %v1508_v44, %v1508_v44 }
 0x6cb   :  { %1550 = vmatmul.mubr.bf16.vlgmr.msra.gmra.mxu0 %v1516_v34  ;;  %1591 = vmatmul.mubr.bf16.vlgmr.msra.gmra.mxu1 %v1516_v34 }
 0x6cc   :  { %1858 = vmatpush3.bf16.msra.mxu0 %v1980_v15  ;;  %1873 = vmatprep.mubr.msk.bf16.mxu0 %vm2102_vm0, %v2101_v7 }
 0x6cd   :  { %1859 = vmatprep.subr.bf16.mxu0 %v2101_v7 }
 0x6d0   :  { %1860 = vmatpush3.bf16.msra.mxu0 %v1981_v20 }
 0x6d1   :  { %1861 = vmatprep.subr.bf16.mxu0 %v2101_v7 }
 0x6d4   :  { %1862 = vmatpush3.bf16.msra.mxu0 %v1982_v32 }
 0x6d5   :  { %1863 = vmatprep.subr.bf16.mxu0 %v2101_v7 }
 0x6d8   :  { %1864 = vmatpush3.bf16.msra.mxu0 %v1983_v53 }
 0x6d9   :  { %1865 = vmatprep.subr.bf16.mxu0 %v2101_v7 }
 0x6dc   :  { %1866 = vmatpush3.bf16.msra.mxu0 %v1984_v1 }
 0x6dd   :  { %1867 = vmatprep.subr.bf16.mxu0 %v2101_v7 }
 0x6e0   :  { %1868 = vmatpush3.bf16.msra.mxu0 %v1985_v16 }
 0x6e1   :  { %1869 = vmatprep.subr.bf16.mxu0 %v2101_v7 }
 0x6e4   :  { %1870 = vmatpush3.bf16.msra.mxu0 %v1986_v11 }
 0x6e5   :  { %1871 = vmatprep.subr.bf16.mxu0 %v2101_v7 }
 0x6e8   :  { %1872 = vmatpush3.bf16.msra.mxu0 %v1987_v31 }
 0x78b   :  { %v1551_v12 = vpop.f32.mrf.mxu0  ;;  %v1592_v26 = vpop.f32.mrf.mxu1 }
 0x78c   :  { %v1599_v23 = vadd.f32 %v1551_v12, %v1512_v8  ;;  %v1601_v18 = vadd.f32 %v1592_v26, %v1514_v6 }
 0x78d   :  { %v1553_v21 = vpop.f32.mrf.mxu0  ;;  %v1594_v62 = vpop.f32.mrf.mxu1 }
 0x78e   :  { %v1603_v35 = vmul.f32 0.5, %v1599_v23  ;;  %v1600_v9 = vadd.f32 %v1553_v21, %v1513_v10  ;;  %v1602_v24 = vadd.f32 %v1594_v62, %v1515_v29 }
 0x78f   :  { %v1555_v13 = vpop.f32.mrf.mxu0  ;;  %v1596_v17 = vpop.f32.mrf.mxu1 }
 0x790   :  { %2058 = vtanh.f32 %v1603_v35  ;;  %v1607_v28 = vmul.f32 0.5, %v1600_v9  ;;  %v1612_v36 = vmul.f32 0.5, %v1602_v24 }
 0x791   :  { %v1556_v27 = vpop.f32.mrf.mxu0  ;;  %v1597_v25 = vpop.f32.mrf.mxu1 }
 0x792   :  { %2060 = vtanh.f32 %v1607_v28 }
 0x793   :  { %2062 = vtanh.f32 %v1601_v18 }
 0x794   :  { %2064 = vtanh.f32 %v1612_v36 }
 0x79d   :  { %v2059_v30 = vpop.eup %2058 }
 0x79e   :  { %v1605_v37 = vadd.f32 1.0, %v2059_v30 }
 0x79f   :  { %v2061_v38 = vpop.eup %2060 }
 0x7a0   :  { %v1606_v48 = vmul.f32 0.5, %v1605_v37  ;;  %v1609_v49 = vadd.f32 1.0, %v2061_v38  ;;  %v2063_v50 = vpop.eup %2062 }
 0x7a1   :  { %v2065_v56 = vpop.eup %2064 }
 0x7a2   :  { %v1610_v51 = vmul.f32 0.5, %v1609_v49  ;;  %v1617_v52 = vmul.f32 %v2063_v50, %v1606_v48  ;;  %v1614_v57 = vadd.f32 1.0, %v2065_v56 }
 0x7a4   :  { %v1616_v54 = vmul.f32 %v1610_v51, %v2856_v46  ;;  %v1615_v58 = vmul.f32 0.5, %v1614_v57 }
 0x7a6   :  { %v1618_v55 = vadd.f32 %v1617_v52, %v1616_v54 }
 0x7a8   :  { %2066 = vtanh.f32 %v1618_v55 }
 0x7b5   :  { %v2067_v59 = vpop.eup %2066 }
 0x7b6   :  { %v1620_v60 = vmul.f32 %v2067_v59, %v1615_v58 }
 0x7b8   :  { %v1621_v61 = vmax.f32 %v1620_v60, 0.0 }
 0x7ba   :  { %v1622_v63 = vpack.c.bf16 %v1621_v61, %v1621_v61 }
 0x7bc   :  { %1874 = vmatmul.mubr.bf16.vlgmr.msra.gmra.mxu0 %v1622_v63 }
 0x87c   :  { %v1728_v2 = vpop.f32.mrf.mxu0 }
 0x87d   :  { %v1729_v3 = vadd.f32 %v1823_v0, %v1728_v2 }
 0x87e   :  { %v1875_v4 = vpop.f32.mrf.mxu0 }
 0x87f   :  { %1734 = vst [vmem:[%s2899_s5] sm:$0xff] %v1729_v3 }
 0x880   :  { %v1731_v5 = vpop.f32.mrf.mxu0 }
 0x882   :  { %v1876_v39 = vpop.f32.mrf.mxu0 }

</bundles_post_ra>
